<compile_context>
chip_gen: v6e
topology: v6e:2x2x1
jax: 0.10.0
libtpu: 0.0.40
codegen_flags: <defaults>
</compile_context>

<pallas_src>
import numpy as np
import jax
import jax.numpy as jnp
from jax import lax
from jax.experimental import pallas as pl
from jax.experimental.pallas import tpu as pltpu

LANE = 128       # TPU lane width: every gate is padded to a multiple of this.
BATCH_TILE = 8   # sequences processed together per grid step (sublane-dense).


def _round_up(n, m):
    return ((n + m - 1) // m) * m


# ------------------------------ BiLSTM kernel ---------------------------------

def _bilstm_kernel(lens_sref,                       # SMEM (Bp,) scalar prefetch
                   lens_ref, x_ref, wcat_ref, bcat_ref, whh_f_ref, whh_b_ref,
                   out_f_ref, out_b_ref,            # VMEM outputs (T, Bt, Hp)
                   gx_sc):                          # VMEM scratch (T, Bt, 8*Hp)
    T, Bt, D = x_ref.shape
    Hp = whh_f_ref.shape[0]
    G = 4 * Hp

    # Dynamic trip count: longest sequence in this batch tile (skip padding).
    tile = pl.program_id(0)

    def _max_body(j, m):
        return jnp.maximum(m, lens_sref[tile * Bt + j])

    l_max = lax.fori_loop(0, Bt, _max_body, jnp.int32(0))

    # Rows t >= l_max (and fully padded sequences) must be zero
    # (pad_packed_sequence semantics) -> one dense zero-fill.
    out_f_ref[...] = jnp.zeros_like(out_f_ref)
    out_b_ref[...] = jnp.zeros_like(out_b_ref)

    lens_vec = lens_ref[...]                        # (Bt, 1) int32 lengths

    # Fused input-gate precompute for BOTH directions: one big MXU matmul
    # (bf16 operands, f32 accumulation), stored time-major for dense per-step
    # (Bt, 8*Hp) loads inside the recurrence.
    x2 = x_ref[...].reshape(T * Bt, D)
    gx = jnp.dot(x2, wcat_ref[...], preferred_element_type=jnp.float32)
    gx_sc[...] = (gx + bcat_ref[...]).reshape(T, Bt, 2 * G)

    h0 = jnp.zeros((Bt, Hp), jnp.float32)
    c0 = jnp.zeros((Bt, Hp), jnp.float32)

    def cell(t, h, c, whh_ref, gate_off):
        # (Bt, Hp) @ (Hp, 4*Hp) recurrent matmul; h/c live in vregs (carries).
        gx_t = gx_sc[t]                              # dense (Bt, 8*Hp) load
        g = gx_t[:, gate_off:gate_off + G] + jnp.dot(
            h.astype(whh_ref.dtype), whh_ref[...],
            preferred_element_type=jnp.float32)
        # Gate order (i, f, o, g): one contiguous sigmoid over 3*Hp lanes,
        # all slice boundaries 128-aligned (Hp is a multiple of 128).
        s = jax.nn.sigmoid(g[:, :3 * Hp])
        i = s[:, 0 * Hp:1 * Hp]
        f = s[:, 1 * Hp:2 * Hp]
        o = s[:, 2 * Hp:3 * Hp]
        gg = jnp.tanh(g[:, 3 * Hp:])
        c_new = f * c + i * gg
        h_new = o * jnp.tanh(c_new)
        valid = t < lens_vec                         # (Bt, 1) per-sequence mask
        return (jnp.where(valid, h_new, h),          # freeze carry past length
                jnp.where(valid, c_new, c),
                jnp.where(valid, h_new, 0.0))        # padded outputs are 0

    # Forward direction: t = 0 .. l_max-1.
    def fwd_body(t, carry):
        h, c, out = cell(t, carry[0], carry[1], whh_f_ref, 0)
        out_f_ref[t] = out                           # dense (Bt, Hp) store
        return (h, c)

    lax.fori_loop(0, l_max, fwd_body, (h0, c0))

    # Reverse direction: t = l_max-1 .. 0.  The carry is held at its zero init
    # (via the `valid` freeze) until t < L for each sequence, which reproduces
    # the packed-sequence reverse LSTM (starts at t = L-1 with zero state).
    def bwd_body(s, carry):
        t = l_max - 1 - s
        h, c, out = cell(t, carry[0], carry[1], whh_b_ref, G)
        out_b_ref[t] = out
        return (h, c)

    lax.fori_loop(0, l_max, bwd_body, (h0, c0))


def bilstm(x, x_lens, p):
    """x: (B, T, D) padded, batch-first.  Returns (B, T, 2H), rows >= len are 0."""
    B, T, D = x.shape
    H = p["hidden"]
    Hp = p["whh_f"].shape[0]
    Bt = BATCH_TILE
    Bp = _round_up(B, Bt)

    lens = jnp.zeros((Bp,), jnp.int32).at[:B].set(jnp.asarray(x_lens, jnp.int32))
    xp = jnp.zeros((Bp, T, D), jnp.float32).at[:B].set(x)
    # Time-major + bf16 operands for the MXU (f32 accumulation in the kernel).
    x_tm = jnp.transpose(xp, (1, 0, 2)).astype(jnp.bfloat16)      # (T, Bp, D)
    lens_2d = lens.reshape(Bp, 1)

    grid_spec = pltpu.PrefetchScalarGridSpec(
        num_scalar_prefetch=1,                     # lens -> SMEM (trip counts)
        grid=(Bp // Bt,),
        in_specs=[
            pl.BlockSpec((Bt, 1), lambda b, lens: (b, 0)),
            pl.BlockSpec((T, Bt, D), lambda b, lens: (0, b, 0)),
            pl.BlockSpec((D, 8 * Hp), lambda b, lens: (0, 0)),
            pl.BlockSpec((1, 8 * Hp), lambda b, lens: (0, 0)),
            pl.BlockSpec((Hp, 4 * Hp), lambda b, lens: (0, 0)),
            pl.BlockSpec((Hp, 4 * Hp), lambda b, lens: (0, 0)),
        ],
        out_specs=[
            pl.BlockSpec((T, Bt, Hp), lambda b, lens: (0, b, 0)),
            pl.BlockSpec((T, Bt, Hp), lambda b, lens: (0, b, 0)),
        ],
        scratch_shapes=[pltpu.VMEM((T, Bt, 8 * Hp), jnp.float32)],
    )
    out_f, out_b = pl.pallas_call(
        _bilstm_kernel,
        out_shape=(jax.ShapeDtypeStruct((T, Bp, Hp), jnp.float32),
                   jax.ShapeDtypeStruct((T, Bp, Hp), jnp.float32)),
        grid_spec=grid_spec,
        compiler_params=pltpu.CompilerParams(
            dimension_semantics=("parallel",),      # batch tiles independent
            vmem_limit_bytes=48 << 20),             # fits v7x's 64 MiB per TC
    )(lens, lens_2d, x_tm, p["wcat"], p["bcat"], p["whh_f"], p["whh_b"])

    # (T, Bp, Hp) x 2 -> (B, T, 2H): strip batch/lane padding, concat, transpose.
    out = jnp.concatenate([out_f[:, :B, :H], out_b[:, :B, :H]], axis=-1)
    return jnp.transpose(out, (1, 0, 2))


# ----------------------------- pBLSTM forward ----------------------------------

def trunc_reshape(x, x_lens):
    """pBLSTM.trunc_reshape: drop the last frame if T is odd, fold frame pairs."""
    if x.shape[1] % 2 != 0:
        x = x[:, :-1, :]
        x_lens = x_lens - 1
    x = x.reshape(x.shape[0], x.shape[1] // 2, x.shape[2] * 2)
    return x, x_lens // 2


def pblstm_forward(x, x_lens, params, downsample=False):
    """pBLSTM forward (inference).  Input/output are padded batch-first tensors
    plus per-sequence lengths (the PackedSequence container is emulated by
    length masking inside the kernel: padded steps are exactly zero)."""
    # TODO(synk): training-mode LockedDropout(p=0.05) mask is not reproduced.
    if downsample:
        x, x_lens = trunc_reshape(x, x_lens)
    return bilstm(x, x_lens, params), x_lens


# --------------------------- parameters & reference ----------------------------

def init_torch_lstm_params(key, input_size, hidden_size):
    """Random params in PyTorch nn.LSTM layout: w_ih (4H, D), w_hh (4H, H),
    b_ih/b_hh (4H,), gate order (i, f, g, o), U(-1/sqrt(H), 1/sqrt(H))."""
    ks = jax.random.split(key, 8)
    s = 1.0 / np.sqrt(hidden_size)
    u = lambda k, shape: jax.random.uniform(k, shape, jnp.float32, -s, s)
    return {
        "w_ih_f": u(ks[0], (4 * hidden_size, input_size)),
        "w_hh_f": u(ks[1], (4 * hidden_size, hidden_size)),
        "b_ih_f": u(ks[2], (4 * hidden_size,)),
        "b_hh_f": u(ks[3], (4 * hidden_size,)),
        "w_ih_b": u(ks[4], (4 * hidden_size, input_size)),
        "w_hh_b": u(ks[5], (4 * hidden_size, hidden_size)),
        "b_ih_b": u(ks[6], (4 * hidden_size,)),
        "b_hh_b": u(ks[7], (4 * hidden_size,)),
        "hidden": hidden_size,
    }


def _pack_gates(w, H, Hp):
    """(4H, X) torch gate order (i,f,g,o) -> (X, 4*Hp) kernel order (i,f,o,g),
    each gate zero-padded from H to Hp lanes (128-aligned gate boundaries).
    Zero padding is inert: preact 0 -> i=f=o=0.5, g=0 -> padded h lanes stay 0."""
    i, f, g, o = (w[k * H:(k + 1) * H] for k in range(4))
    pad = lambda blk: jnp.pad(blk.T, ((0, 0), (0, Hp - H)))
    return jnp.concatenate([pad(i), pad(f), pad(o), pad(g)], axis=1)


def prepare_lstm_params(tp):
    """Convert torch-layout params to the fused / padded / transposed kernel layout."""
    H = tp["hidden"]
    Hp = _round_up(H, LANE)
    wih_f = _pack_gates(tp["w_ih_f"], H, Hp)                         # (D, 4Hp)
    wih_b = _pack_gates(tp["w_ih_b"], H, Hp)
    whh_f = jnp.pad(_pack_gates(tp["w_hh_f"], H, Hp), ((0, Hp - H), (0, 0)))
    whh_b = jnp.pad(_pack_gates(tp["w_hh_b"], H, Hp), ((0, Hp - H), (0, 0)))
    b_f = _pack_gates((tp["b_ih_f"] + tp["b_hh_f"]).reshape(4 * H, 1), H, Hp)
    b_b = _pack_gates((tp["b_ih_b"] + tp["b_hh_b"]).reshape(4 * H, 1), H, Hp)
    return {
        # fused fwd|bwd input projection -> single (D, 8*Hp) matmul per block
        "wcat": jnp.concatenate([wih_f, wih_b], axis=1).astype(jnp.bfloat16),
        "bcat": jnp.concatenate([b_f, b_b], axis=1),                 # (1, 8Hp) f32
        "whh_f": whh_f.astype(jnp.bfloat16),
        "whh_b": whh_b.astype(jnp.bfloat16),
        "hidden": H,
    }


def ref_bilstm(x, lens, tp):
    """NumPy float64 reference: PyTorch-semantics bidirectional LSTM over a
    padded input with per-sequence lengths (zeros past each length)."""
    x = np.asarray(x, np.float64)
    B, T, _ = x.shape
    H = tp["hidden"]
    sig = lambda z: 1.0 / (1.0 + np.exp(-z))
    out = np.zeros((B, T, 2 * H), np.float64)
    dirs = [(tp["w_ih_f"], tp["w_hh_f"], tp["b_ih_f"], tp["b_hh_f"], False),
            (tp["w_ih_b"], tp["w_hh_b"], tp["b_ih_b"], tp["b_hh_b"], True)]
    for b in range(B):
        L = int(lens[b])
        for d, (wi, wh, bi, bh, rev) in enumerate(dirs):
            wi = np.asarray(wi, np.float64)
            wh = np.asarray(wh, np.float64)
            bias = np.asarray(bi, np.float64) + np.asarray(bh, np.float64)
            h = np.zeros(H)
            c = np.zeros(H)
            steps = range(L - 1, -1, -1) if rev else range(L)
            for t in steps:
                g = wi @ x[b, t] + wh @ h + bias
                i, f = sig(g[:H]), sig(g[H:2 * H])
                gg, o = np.tanh(g[2 * H:3 * H]), sig(g[3 * H:])
                c = f * c + i * gg
                h = o * np.tanh(c)
                out[b, t, d * H:(d + 1) * H] = h
    return out


# ------------------------------------ demo -------------------------------------

if __name__ == "__main__":
    B, T, input_size, hidden = 2, 16, 32, 32

    key = jax.random.PRNGKey(0)
    kx, k1, k2 = jax.random.split(key, 3)
    x_lens = np.array([16, 13], dtype=np.int32)
    x = jax.random.normal(kx, (B, T, input_size), jnp.float32)
    # pad_packed_sequence pads with zeros -> zero the padded frames.
    x = x * jnp.asarray(np.arange(T)[None, :, None] < x_lens[:, None, None],
                        jnp.float32)

    # Layer 1: plain BiLSTM (downsample=False); layer 2: pyramidal (downsample=True).
    tp1 = init_torch_lstm_params(k1, input_size, hidden)
    tp2 = init_torch_lstm_params(k2, 4 * hidden, hidden)     # input = 2 * (2H)
    p1, p2 = prepare_lstm_params(tp1), prepare_lstm_params(tp2)

    h1, lens1 = pblstm_forward(x, x_lens, p1, downsample=False)     # (2, 16, 64)
    h2, lens2 = pblstm_forward(h1, lens1, p2, downsample=True)      # (2, 8, 64)
    h1, h2 = jax.block_until_ready((h1, h2))

    assert h1.shape == (B, T, 2 * hidden), h1.shape
    assert h2.shape == (B, T // 2, 2 * hidden), h2.shape
    assert bool(jnp.all(jnp.isfinite(h1))) and bool(jnp.all(jnp.isfinite(h2)))

    # Numeric check vs. a float64 reference (bf16 matmul operands -> loose tol).
    r1 = ref_bilstm(np.asarray(x), x_lens, tp1)
    np.testing.assert_allclose(np.asarray(h1), r1, rtol=0.1, atol=0.05)
    x2_ref, lens2_ref = trunc_reshape(np.asarray(h1), x_lens.copy())
    r2 = ref_bilstm(x2_ref, lens2_ref, tp2)
    np.testing.assert_allclose(np.asarray(h2), r2, rtol=0.1, atol=0.05)
    assert np.array_equal(np.asarray(lens2), np.asarray(lens2_ref))

    print("KERNEL_OK")
</pallas_src>

<mosaic_0001>
module attributes {stable_mosaic.version = 11 : i64} {
  func.func @_bilstm_kernel(%arg0: i32, %arg1: memref<8xi32, #tpu.memory_space<smem>>, %arg2: memref<8x1xi32, #tpu.memory_space<vmem>>, %arg3: memref<16x8x32xbf16, #tpu.memory_space<vmem>>, %arg4: memref<32x1024xbf16, #tpu.memory_space<vmem>>, %arg5: memref<1x1024xf32, #tpu.memory_space<vmem>>, %arg6: memref<128x512xbf16, #tpu.memory_space<vmem>>, %arg7: memref<128x512xbf16, #tpu.memory_space<vmem>>, %arg8: memref<16x8x128xf32, #tpu.memory_space<vmem>>, %arg9: memref<16x8x128xf32, #tpu.memory_space<vmem>>, %arg10: memref<16x8x1024xf32, #tpu.memory_space<vmem>>) attributes {dimension_semantics = [#tpu.dimension_semantics<parallel>], iteration_bounds = array<i64: 1>, scalar_prefetch = 1 : i64, scratch_operands = 1 : i64, tpu.core_type = #tpu.core_type<tc>, window_params = [{transform_indices = @transform_0, window_bounds = array<i64: 8, 1>}, {transform_indices = @transform_1, window_bounds = array<i64: 16, 8, 32>}, {pipeline_mode = #tpu.pipeline_mode<synchronous>, transform_indices = @transform_2, window_bounds = array<i64: 32, 1024>}, {pipeline_mode = #tpu.pipeline_mode<synchronous>, transform_indices = @transform_3, window_bounds = array<i64: 1, 1024>}, {pipeline_mode = #tpu.pipeline_mode<synchronous>, transform_indices = @transform_4, window_bounds = array<i64: 128, 512>}, {pipeline_mode = #tpu.pipeline_mode<synchronous>, transform_indices = @transform_5, window_bounds = array<i64: 128, 512>}, {transform_indices = @transform_6, window_bounds = array<i64: 16, 8, 128>}, {transform_indices = @transform_7, window_bounds = array<i64: 16, 8, 128>}]} {
    %c0_i32 = arith.constant 0 : i32
    %c0_i32_0 = arith.constant 0 : i32
    %c8_i32 = arith.constant 8 : i32
    %0 = arith.addi %c0_i32_0, %c8_i32 : i32
    %c1_i32 = arith.constant 1 : i32
    %1 = scf.for %arg11 = %c0_i32_0 to %0 step %c1_i32 iter_args(%arg12 = %c0_i32) -> (i32)  : i32 {
      %c8_i32_27 = arith.constant 8 : i32
      %24 = arith.muli %arg0, %c8_i32_27 : i32
      %25 = arith.addi %24, %arg11 : i32
      %26 = arith.index_cast %25 : i32 to index
      %27 = memref.load %arg1[%26] : memref<8xi32, #tpu.memory_space<smem>>
      %28 = arith.maxsi %arg12, %27 : i32
      scf.yield %28 : i32
    }
    %c8_i32_1 = arith.constant 8 : i32
    %cst = arith.constant 0.000000e+00 : f32
    %2 = vector.broadcast %cst : f32 to vector<16x8x128xf32>
    %c0 = arith.constant 0 : index
    %c0_2 = arith.constant 0 : index
    %c0_3 = arith.constant 0 : index
    %3 = vector.load %arg8[%c0, %c0_2, %c0_3] : memref<16x8x128xf32, #tpu.memory_space<vmem>>, vector<16x8x128xf32>
    tpu.vector_store %arg8[%c0, %c0_2, %c0_3], %2 {strides = array<i32>} : memref<16x8x128xf32, #tpu.memory_space<vmem>>, vector<16x8x128xf32>,
    %cst_4 = arith.constant 0.000000e+00 : f32
    %4 = vector.broadcast %cst_4 : f32 to vector<16x8x128xf32>
    %c0_5 = arith.constant 0 : index
    %c0_6 = arith.constant 0 : index
    %c0_7 = arith.constant 0 : index
    %5 = vector.load %arg9[%c0_5, %c0_6, %c0_7] : memref<16x8x128xf32, #tpu.memory_space<vmem>>, vector<16x8x128xf32>
    tpu.vector_store %arg9[%c0_5, %c0_6, %c0_7], %4 {strides = array<i32>} : memref<16x8x128xf32, #tpu.memory_space<vmem>>, vector<16x8x128xf32>,
    %c0_8 = arith.constant 0 : index
    %c0_9 = arith.constant 0 : index
    %6 = vector.load %arg2[%c0_8, %c0_9] : memref<8x1xi32, #tpu.memory_space<vmem>>, vector<8x1xi32>
    %c0_10 = arith.constant 0 : index
    %c0_11 = arith.constant 0 : index
    %c0_12 = arith.constant 0 : index
    %7 = vector.load %arg3[%c0_10, %c0_11, %c0_12] : memref<16x8x32xbf16, #tpu.memory_space<vmem>>, vector<16x8x32xbf16>
    %8 = vector.shape_cast %7 : vector<16x8x32xbf16> to vector<128x32xbf16>
    %c0_13 = arith.constant 0 : index
    %c0_14 = arith.constant 0 : index
    %9 = vector.load %arg4[%c0_13, %c0_14] : memref<32x1024xbf16, #tpu.memory_space<vmem>>, vector<32x1024xbf16>
    %cst_15 = arith.constant dense<0.000000e+00> : vector<128x1024xf32>
    %10 = tpu.matmul %8, %9, %cst_15 {dimension_numbers = #tpu.dot_dimension_numbers<[1], [0], [0], [1], [0, 0, 1, 1], [], []>} : vector<128x32xbf16>, vector<32x1024xbf16>, vector<128x1024xf32> -> vector<128x1024xf32>
    %c0_16 = arith.constant 0 : index
    %c0_17 = arith.constant 0 : index
    %11 = vector.load %arg5[%c0_16, %c0_17] : memref<1x1024xf32, #tpu.memory_space<vmem>>, vector<1x1024xf32>
    %12 = vector.broadcast %11 : vector<1x1024xf32> to vector<128x1024xf32>
    %13 = arith.addf %10, %12 : vector<128x1024xf32>
    %14 = vector.shape_cast %13 : vector<128x1024xf32> to vector<16x8x1024xf32>
    %c0_18 = arith.constant 0 : index
    %c0_19 = arith.constant 0 : index
    %c0_20 = arith.constant 0 : index
    %15 = vector.load %arg10[%c0_18, %c0_19, %c0_20] : memref<16x8x1024xf32, #tpu.memory_space<vmem>>, vector<16x8x1024xf32>
    tpu.vector_store %arg10[%c0_18, %c0_19, %c0_20], %14 {strides = array<i32>} : memref<16x8x1024xf32, #tpu.memory_space<vmem>>, vector<16x8x1024xf32>,
    %cst_21 = arith.constant 0.000000e+00 : f32
    %16 = vector.broadcast %cst_21 : f32 to vector<8x128xf32>
    %cst_22 = arith.constant 0.000000e+00 : f32
    %17 = vector.broadcast %cst_22 : f32 to vector<8x128xf32>
    %c0_i32_23 = arith.constant 0 : i32
    %18 = arith.subi %1, %c0_i32_23 : i32
    %19 = arith.addi %c0_i32_23, %18 : i32
    %c1_i32_24 = arith.constant 1 : i32
    %20:2 = scf.for %arg11 = %c0_i32_23 to %19 step %c1_i32_24 iter_args(%arg12 = %16, %arg13 = %17) -> (vector<8x128xf32>, vector<8x128xf32>)  : i32 {
      %24 = arith.index_cast %arg11 : i32 to index
      %c0_27 = arith.constant 0 : index
      %c0_28 = arith.constant 0 : index
      %25 = vector.load %arg10[%24, %c0_27, %c0_28] : memref<16x8x1024xf32, #tpu.memory_space<vmem>>, vector<1x8x1024xf32>
      %26 = vector.shape_cast %25 : vector<1x8x1024xf32> to vector<8x1024xf32>
      %27 = vector.extract_strided_slice %26 {offsets = [0, 0], sizes = [8, 512], strides = [1, 1]} : vector<8x1024xf32> to vector<8x512xf32>
      %28 = arith.truncf %arg12 : vector<8x128xf32> to vector<8x128xbf16>
      %c0_29 = arith.constant 0 : index
      %c0_30 = arith.constant 0 : index
      %29 = vector.load %arg6[%c0_29, %c0_30] : memref<128x512xbf16, #tpu.memory_space<vmem>>, vector<128x512xbf16>
      %cst_31 = arith.constant dense<0.000000e+00> : vector<8x512xf32>
      %30 = tpu.matmul %28, %29, %cst_31 {dimension_numbers = #tpu.dot_dimension_numbers<[1], [0], [0], [1], [0, 0, 1, 1], [], []>} : vector<8x128xbf16>, vector<128x512xbf16>, vector<8x512xf32> -> vector<8x512xf32>
      %31 = arith.addf %27, %30 : vector<8x512xf32>
      %32 = vector.extract_strided_slice %31 {offsets = [0, 0], sizes = [8, 384], strides = [1, 1]} : vector<8x512xf32> to vector<8x384xf32>
      %33 = arith.negf %32 : vector<8x384xf32>
      %34 = math.exp %33 : vector<8x384xf32>
      %cst_32 = arith.constant 1.000000e+00 : f32
      %35 = vector.broadcast %cst_32 : f32 to vector<8x384xf32>
      %36 = arith.addf %35, %34 : vector<8x384xf32>
      %37 = arith.divf %35, %36 : vector<8x384xf32>
      %38 = vector.extract_strided_slice %37 {offsets = [0, 0], sizes = [8, 128], strides = [1, 1]} : vector<8x384xf32> to vector<8x128xf32>
      %39 = vector.extract_strided_slice %37 {offsets = [0, 128], sizes = [8, 128], strides = [1, 1]} : vector<8x384xf32> to vector<8x128xf32>
      %40 = vector.extract_strided_slice %37 {offsets = [0, 256], sizes = [8, 128], strides = [1, 1]} : vector<8x384xf32> to vector<8x128xf32>
      %41 = vector.extract_strided_slice %31 {offsets = [0, 384], sizes = [8, 128], strides = [1, 1]} : vector<8x512xf32> to vector<8x128xf32>
      %42 = math.tanh %41 : vector<8x128xf32>
      %43 = arith.mulf %39, %arg13 : vector<8x128xf32>
      %44 = arith.mulf %38, %42 : vector<8x128xf32>
      %45 = arith.addf %43, %44 : vector<8x128xf32>
      %46 = math.tanh %45 : vector<8x128xf32>
      %47 = arith.mulf %40, %46 : vector<8x128xf32>
      %48 = vector.broadcast %arg11 : i32 to vector<8x1xi32>
      %49 = arith.cmpi slt, %48, %6 : vector<8x1xi32>
      %50 = vector.shape_cast %49 : vector<8x1xi1> to vector<8x1xi1>
      %51 = vector.broadcast %50 : vector<8x1xi1> to vector<8x128xi1>
      %52 = arith.select %51, %47, %arg12 : vector<8x128xi1>, vector<8x128xf32>
      %53 = vector.shape_cast %49 : vector<8x1xi1> to vector<8x1xi1>
      %54 = vector.broadcast %53 : vector<8x1xi1> to vector<8x128xi1>
      %55 = arith.select %54, %45, %arg13 : vector<8x128xi1>, vector<8x128xf32>
      %cst_33 = arith.constant 0.000000e+00 : f32
      %56 = vector.shape_cast %49 : vector<8x1xi1> to vector<8x1xi1>
      %57 = vector.broadcast %56 : vector<8x1xi1> to vector<8x128xi1>
      %58 = vector.broadcast %cst_33 : f32 to vector<8x128xf32>
      %59 = arith.select %57, %47, %58 : vector<8x128xi1>, vector<8x128xf32>
      %60 = arith.index_cast %arg11 : i32 to index
      %c0_34 = arith.constant 0 : index
      %c0_35 = arith.constant 0 : index
      %61 = vector.load %arg8[%60, %c0_34, %c0_35] : memref<16x8x128xf32, #tpu.memory_space<vmem>>, vector<1x8x128xf32>
      %62 = vector.shape_cast %61 : vector<1x8x128xf32> to vector<8x128xf32>
      %63 = vector.shape_cast %59 : vector<8x128xf32> to vector<1x8x128xf32>
      tpu.vector_store %arg8[%60, %c0_34, %c0_35], %63 {strides = array<i32>} : memref<16x8x128xf32, #tpu.memory_space<vmem>>, vector<1x8x128xf32>,
      scf.yield %52, %55 : vector<8x128xf32>, vector<8x128xf32>
    }
    %c0_i32_25 = arith.constant 0 : i32
    %21 = arith.subi %1, %c0_i32_25 : i32
    %22 = arith.addi %c0_i32_25, %21 : i32
    %c1_i32_26 = arith.constant 1 : i32
    %23:2 = scf.for %arg11 = %c0_i32_25 to %22 step %c1_i32_26 iter_args(%arg12 = %16, %arg13 = %17) -> (vector<8x128xf32>, vector<8x128xf32>)  : i32 {
      %c1_i32_27 = arith.constant 1 : i32
      %24 = arith.subi %1, %c1_i32_27 : i32
      %25 = arith.subi %24, %arg11 : i32
      %26 = arith.index_cast %25 : i32 to index
      %c0_28 = arith.constant 0 : index
      %c0_29 = arith.constant 0 : index
      %27 = vector.load %arg10[%26, %c0_28, %c0_29] : memref<16x8x1024xf32, #tpu.memory_space<vmem>>, vector<1x8x1024xf32>
      %28 = vector.shape_cast %27 : vector<1x8x1024xf32> to vector<8x1024xf32>
      %29 = vector.extract_strided_slice %28 {offsets = [0, 512], sizes = [8, 512], strides = [1, 1]} : vector<8x1024xf32> to vector<8x512xf32>
      %30 = arith.truncf %arg12 : vector<8x128xf32> to vector<8x128xbf16>
      %c0_30 = arith.constant 0 : index
      %c0_31 = arith.constant 0 : index
      %31 = vector.load %arg7[%c0_30, %c0_31] : memref<128x512xbf16, #tpu.memory_space<vmem>>, vector<128x512xbf16>
      %cst_32 = arith.constant dense<0.000000e+00> : vector<8x512xf32>
      %32 = tpu.matmul %30, %31, %cst_32 {dimension_numbers = #tpu.dot_dimension_numbers<[1], [0], [0], [1], [0, 0, 1, 1], [], []>} : vector<8x128xbf16>, vector<128x512xbf16>, vector<8x512xf32> -> vector<8x512xf32>
      %33 = arith.addf %29, %32 : vector<8x512xf32>
      %34 = vector.extract_strided_slice %33 {offsets = [0, 0], sizes = [8, 384], strides = [1, 1]} : vector<8x512xf32> to vector<8x384xf32>
      %35 = arith.negf %34 : vector<8x384xf32>
      %36 = math.exp %35 : vector<8x384xf32>
      %cst_33 = arith.constant 1.000000e+00 : f32
      %37 = vector.broadcast %cst_33 : f32 to vector<8x384xf32>
      %38 = arith.addf %37, %36 : vector<8x384xf32>
      %39 = arith.divf %37, %38 : vector<8x384xf32>
      %40 = vector.extract_strided_slice %39 {offsets = [0, 0], sizes = [8, 128], strides = [1, 1]} : vector<8x384xf32> to vector<8x128xf32>
      %41 = vector.extract_strided_slice %39 {offsets = [0, 128], sizes = [8, 128], strides = [1, 1]} : vector<8x384xf32> to vector<8x128xf32>
      %42 = vector.extract_strided_slice %39 {offsets = [0, 256], sizes = [8, 128], strides = [1, 1]} : vector<8x384xf32> to vector<8x128xf32>
      %43 = vector.extract_strided_slice %33 {offsets = [0, 384], sizes = [8, 128], strides = [1, 1]} : vector<8x512xf32> to vector<8x128xf32>
      %44 = math.tanh %43 : vector<8x128xf32>
      %45 = arith.mulf %41, %arg13 : vector<8x128xf32>
      %46 = arith.mulf %40, %44 : vector<8x128xf32>
      %47 = arith.addf %45, %46 : vector<8x128xf32>
      %48 = math.tanh %47 : vector<8x128xf32>
      %49 = arith.mulf %42, %48 : vector<8x128xf32>
      %50 = vector.broadcast %25 : i32 to vector<8x1xi32>
      %51 = arith.cmpi slt, %50, %6 : vector<8x1xi32>
      %52 = vector.shape_cast %51 : vector<8x1xi1> to vector<8x1xi1>
      %53 = vector.broadcast %52 : vector<8x1xi1> to vector<8x128xi1>
      %54 = arith.select %53, %49, %arg12 : vector<8x128xi1>, vector<8x128xf32>
      %55 = vector.shape_cast %51 : vector<8x1xi1> to vector<8x1xi1>
      %56 = vector.broadcast %55 : vector<8x1xi1> to vector<8x128xi1>
      %57 = arith.select %56, %47, %arg13 : vector<8x128xi1>, vector<8x128xf32>
      %cst_34 = arith.constant 0.000000e+00 : f32
      %58 = vector.shape_cast %51 : vector<8x1xi1> to vector<8x1xi1>
      %59 = vector.broadcast %58 : vector<8x1xi1> to vector<8x128xi1>
      %60 = vector.broadcast %cst_34 : f32 to vector<8x128xf32>
      %61 = arith.select %59, %49, %60 : vector<8x128xi1>, vector<8x128xf32>
      %62 = arith.index_cast %25 : i32 to index
      %c0_35 = arith.constant 0 : index
      %c0_36 = arith.constant 0 : index
      %63 = vector.load %arg9[%62, %c0_35, %c0_36] : memref<16x8x128xf32, #tpu.memory_space<vmem>>, vector<1x8x128xf32>
      %64 = vector.shape_cast %63 : vector<1x8x128xf32> to vector<8x128xf32>
      %65 = vector.shape_cast %61 : vector<8x128xf32> to vector<1x8x128xf32>
      tpu.vector_store %arg9[%62, %c0_35, %c0_36], %65 {strides = array<i32>} : memref<16x8x128xf32, #tpu.memory_space<vmem>>, vector<1x8x128xf32>,
      scf.yield %54, %57 : vector<8x128xf32>, vector<8x128xf32>
    }
    return
  }
  func.func @transform_0(%arg0: i32, %arg1: memref<8xi32, #tpu.memory_space<smem>>) -> (i32, i32) {
    %c0_i32 = arith.constant 0 : i32
    %c0_i32_0 = arith.constant 0 : i32
    return %arg0, %c0_i32 : i32, i32
  }
  func.func @transform_1(%arg0: i32, %arg1: memref<8xi32, #tpu.memory_space<smem>>) -> (i32, i32, i32) {
    %c0_i32 = arith.constant 0 : i32
    %c0_i32_0 = arith.constant 0 : i32
    %c0_i32_1 = arith.constant 0 : i32
    return %c0_i32, %arg0, %c0_i32_0 : i32, i32, i32
  }
  func.func @transform_2(%arg0: i32, %arg1: memref<8xi32, #tpu.memory_space<smem>>) -> (i32, i32) {
    %c0_i32 = arith.constant 0 : i32
    %c0_i32_0 = arith.constant 0 : i32
    %c0_i32_1 = arith.constant 0 : i32
    return %c0_i32, %c0_i32_0 : i32, i32
  }
  func.func @transform_3(%arg0: i32, %arg1: memref<8xi32, #tpu.memory_space<smem>>) -> (i32, i32) {
    %c0_i32 = arith.constant 0 : i32
    %c0_i32_0 = arith.constant 0 : i32
    %c0_i32_1 = arith.constant 0 : i32
    return %c0_i32, %c0_i32_0 : i32, i32
  }
  func.func @transform_4(%arg0: i32, %arg1: memref<8xi32, #tpu.memory_space<smem>>) -> (i32, i32) {
    %c0_i32 = arith.constant 0 : i32
    %c0_i32_0 = arith.constant 0 : i32
    %c0_i32_1 = arith.constant 0 : i32
    return %c0_i32, %c0_i32_0 : i32, i32
  }
  func.func @transform_5(%arg0: i32, %arg1: memref<8xi32, #tpu.memory_space<smem>>) -> (i32, i32) {
    %c0_i32 = arith.constant 0 : i32
    %c0_i32_0 = arith.constant 0 : i32
    %c0_i32_1 = arith.constant 0 : i32
    return %c0_i32, %c0_i32_0 : i32, i32
  }
  func.func @transform_6(%arg0: i32, %arg1: memref<8xi32, #tpu.memory_space<smem>>) -> (i32, i32, i32) {
    %c0_i32 = arith.constant 0 : i32
    %c0_i32_0 = arith.constant 0 : i32
    %c0_i32_1 = arith.constant 0 : i32
    return %c0_i32, %arg0, %c0_i32_0 : i32, i32, i32
  }
  func.func @transform_7(%arg0: i32, %arg1: memref<8xi32, #tpu.memory_space<smem>>) -> (i32, i32, i32) {
    %c0_i32 = arith.constant 0 : i32
    %c0_i32_0 = arith.constant 0 : i32
    %c0_i32_1 = arith.constant 0 : i32
    return %c0_i32, %arg0, %c0_i32_0 : i32, i32, i32
  }
}

</mosaic_0001>

<bundles_post_ra>
// kernel: tpu_custom_call.1
= control target key start
LH: loop header
LB: loop body
LE: loop exit
PB: predicated region body
PF: predicated region fallthrough
CT: control target
= control target key end

     0   :  { %s2630_s0 = inlined_call_operand.vmem [shape: s32[8], index: 0, kind: input, shape index: {}]   ;;  %s2631_s1 = inlined_call_operand.vmem [shape: s32[8,1], index: 1, kind: input, shape index: {}]   ;;  %s2632_s2 = inlined_call_operand.hbm [shape: bf16[16,8,32], index: 2, kind: input, shape index: {}]   ;;  %s2633_s3 = inlined_call_operand.hbm [shape: bf16[32,1024], index: 3, kind: input, shape index: {}]   ;;  %s2634_s4 = inlined_call_operand.vmem [shape: f32[1,1024], index: 4, kind: input, shape index: {}]   ;;  %s2635_s5 = inlined_call_operand.hbm [shape: bf16[128,512], index: 5, kind: input, shape index: {}]   ;;  %s2636_s6 = inlined_call_operand.hbm [shape: bf16[128,512], index: 6, kind: input, shape index: {}]   ;;  %s2637_s7 = inlined_call_operand.hbm [shape: f32[16,8,128], index: 7, kind: output, shape index: {0}]   ;;  %s2638_s8 = inlined_call_operand.hbm [shape: f32[16,8,128], index: 8, kind: output, shape index: {1}]  }
   0x1   :  { %s14_s29 = sshll.u32 %s2630_s0, 4  ;;  %s15_s29 = int_to_ptr.vmem [resolvable:$true] %s14_s29 }
   0x2   :  { %s2025_s30 = scalar_lea.vmem %s15_s29, 16  ;;  %p2030_p1 = scmp.lt.s32.totalorder %s15_s29, %s15_s29 }
   0x3   :  { %p2026_p0 = scmp.ne.s32.totalorder %s15_s29, %s2025_s30  ;;  %p2031_p2 = scmp.lt.s32.totalorder %s2025_s30, %s2025_s30 }
   0x5   :  { %p2032_p3 = por %p2031_p2, %p2030_p1 }
   0x7   :  { %p2033_p4 = pnand %p2032_p3, %p2026_p0 }
   0x9   :  { %2036 = shalt.err (!%p2033_p4)  }
   0xa   :  { %s2233_s9 = smov [#allocation4]  }
   0xb   :  { %17 = dma.vmem_to_smem %s15_s29, 16, %s2233_s9, [#allocation3] }
   0xc   :  { %2189 = dma.done.wait [#allocation3], 16 }
   0xd   :  { %2190 = vsyncadd [#allocation3], 4294967280 }
   0xe   :  { %19 = sfence }
   0xf   :  { %20 = vsyncpa [#allocation6], 0 }
  0x10   :  { %21 = vsyncpa [#allocation9], 0 }
  0x11   :  { %22 = vsyncpa [#allocation12], 0 }
  0x12   :  { %23 = vsyncpa [#allocation7], 0 }
  0x13   :  { %24 = vsyncpa [#allocation15], 0  ;;  %s2234_s10 = smov [#allocation8]  }
  0x14   :  { %s44_s0 = sshll.u32 %s2234_s10, 4  ;;  %s45_s0 = int_to_ptr.vmem [resolvable:$true] %s44_s0 }
  0x15   :  { %s2045_s11 = scalar_lea.vmem %s45_s0, 2048  ;;  %p2050_p6 = scmp.lt.s32.totalorder %s45_s0, %s45_s0 }
  0x16   :  { %p2046_p5 = scmp.ne.s32.totalorder %s45_s0, %s2045_s11  ;;  %p2051_p7 = scmp.lt.s32.totalorder %s2045_s11, %s2045_s11 }
  0x18   :  { %p2052_p8 = por %p2051_p7, %p2050_p6 }
  0x1a   :  { %p2053_p9 = pnand %p2052_p8, %p2046_p5 }
  0x1c   :  { %2056 = shalt.err (!%p2053_p9)
}
  0x1d   :  { %s2235_s12 = smov 512   ;;  %s2236_s13 = smov 32  }
  0x1e   :  { %50 = dma.hbm_to_vmem [thread:$0]  %s2633_s3, 2048, %s45_s0, [#allocation9], %s2235_s12, %s2235_s12, %s2236_s13  }
  0x1f   :  { %s2237_s16 = smov [#allocation5]  }
  0x20   :  { %s32_s17 = sshll.u32 %s2237_s16, 4  ;;  %s33_s17 = int_to_ptr.vmem [resolvable:$true] %s32_s17 }
  0x21   :  { %s2065_s18 = scalar_lea.vmem %s33_s17, 1024  ;;  %p2070_p11 = scmp.lt.s32.totalorder %s33_s17, %s33_s17 }
  0x22   :  { %p2066_p10 = scmp.ne.s32.totalorder %s33_s17, %s2065_s18  ;;  %p2071_p12 = scmp.lt.s32.totalorder %s2065_s18, %s2065_s18 }
  0x24   :  { %p2072_p13 = por %p2071_p12, %p2070_p11 }
  0x26   :  { %p2073_p0 = pnand %p2072_p13, %p2066_p10 }
  0x28   :  { %2076 = shalt.err (!%p2073_p0)
}
  0x29   :  { %s2238_s19 = smov 64   ;;  %s2239_s20 = smov 4  }
  0x2a   :  { %38 = dma.hbm_to_vmem [thread:$0]  %s2632_s2, 1024, %s33_s17, [#allocation6], %s2238_s19, %s2238_s19, %s2239_s20  }
  0x2b   :  { %s2240_s23 = smov [#allocation10]  }
  0x2c   :  { %s58_s24 = sshll.u32 %s2240_s23, 4  ;;  %s59_s24 = int_to_ptr.vmem [resolvable:$true] %s58_s24 }
  0x2d   :  { %s2085_s3 = scalar_lea.vmem %s59_s24, 4096  ;;  %p2090_p2 = scmp.lt.s32.totalorder %s59_s24, %s59_s24 }
  0x2e   :  { %p2086_p1 = scmp.ne.s32.totalorder %s59_s24, %s2085_s3  ;;  %p2091_p3 = scmp.lt.s32.totalorder %s2085_s3, %s2085_s3 }
  0x30   :  { %p2092_p4 = por %p2091_p3, %p2090_p2 }
  0x32   :  { %p2093_p5 = pnand %p2092_p4, %p2086_p1 }
  0x34   :  { %2096 = shalt.err (!%p2093_p5)
}
  0x35   :  { %s2241_s25 = smov 256   ;;  %s2242_s26 = smov 16  }
  0x36   :  { %64 = dma.hbm_to_vmem [thread:$0]  %s2635_s5, 4096, %s59_s24, [#allocation9], %s2241_s25, %s2241_s25, %s2242_s26  }
  0x37   :  { %s2243_s29 = smov [#allocation11]  }
  0x38   :  { %s70_s30 = sshll.u32 %s2243_s29, 4  ;;  %s71_s30 = int_to_ptr.vmem [resolvable:$true] %s70_s30 }
  0x39   :  { %s2105_s2 = scalar_lea.vmem %s71_s30, 4096  ;;  %p2110_p7 = scmp.lt.s32.totalorder %s71_s30, %s71_s30 }
  0x3a   :  { %p2106_p6 = scmp.ne.s32.totalorder %s71_s30, %s2105_s2  ;;  %p2111_p8 = scmp.lt.s32.totalorder %s2105_s2, %s2105_s2 }
  0x3c   :  { %p2112_p9 = por %p2111_p8, %p2110_p7 }
  0x3e   :  { %p2113_p10 = pnand %p2112_p9, %p2106_p6 }
  0x40   :  { %2116 = shalt.err (!%p2113_p10)
}
  0x41   :  { %76 = dma.hbm_to_vmem [thread:$0]  %s2636_s6, 4096, %s71_s30, [#allocation12], %s2241_s25, %s2241_s25, %s2242_s26  }
  0x42   :  { %2191 = dma.done.wait [#allocation6], 1024  }
  0x43   :  { %2192 = vsyncadd [#allocation6], 4294966272 }
  0x44   :  { %2193 = dma.done.wait [#allocation9], 6144  }
  0x45   :  { %2194 = vsyncadd [#allocation9], 4294961152 }
  0x46   :  { %2195 = dma.done.wait [#allocation12], 4096  }
  0x47   :  { %2196 = vsyncadd [#allocation12], 4294963200  ;;  %s2201_s5 = smov 0   ;;  %s2205_s0 = smov 0  }
  0x48 LB: > { %s99_s11 = sld [smem:[#allocation4 + %s2207_s0]]  ;;  %s95_s0 = sadd.s32 1, %s2207_s0   ;;  %s2207_s0 = sphi %s2205_s0, %s95_s0   ;;  %s2203_s5 = sphi %s2201_s5, %s2202_s5  }
  0x49   : > { %p92_p12 = scmp.ge.s32.totalorder %s95_s0, 8  }
  0x4a   :  { %v2318_v0 = vld [vmem:[%s2631_s1] sm:$0xff] (%p92_p12)  ;;  %v2244_v3 = vmov (%p92_p12), 0.0   ;;  %v160_v5 = vld [vmem:[#allocation8 + $0x48] sm:$0xff] (%p92_p12)  ;;  %v2245_v9 = vmov (%p92_p12), 0   ;;  %v161_v18 = vld [vmem:[#allocation8 + $0x50] sm:$0xff] (%p92_p12)  ;;  %vm329_vm0 = vcmask (%p92_p12), 261120   ;;  %v169_v43 = vlaneseq (%p92_p12) }
  0x4b   :  { %v159_v1 = vld [vmem:[#allocation8 + $0x40] sm:$0xff] (%p92_p12)  ;;  %102 = vst [vmem:[#allocation13] sm:$0xff] (%p92_p12), %v2244_v3  ;;  %103 = vst [vmem:[#allocation13 + $0x8] sm:$0xff] (%p92_p12), %v2244_v3  ;;  %v164_v6 = vld [vmem:[#allocation8 + $0x68] sm:$0xff] (%p92_p12)  ;;  %386 = vmatprep.mubr.bf16.mxu0 (%p92_p12), %v2245_v9  ;;  %499 = vmatprep.mubr.bf16.mxu1 (%p92_p12), %v2245_v9 }
  0x4c   :  { %v163_v2 = vld [vmem:[#allocation8 + $0x60] sm:$0xff] (%p92_p12)  ;;  %104 = vst [vmem:[#allocation13 + $0x10] sm:$0xff] (%p92_p12), %v2244_v3  ;;  %105 = vst [vmem:[#allocation13 + $0x18] sm:$0xff] (%p92_p12), %v2244_v3  ;;  %v1688_v10 = vcombine.high (%p92_p12), %v160_v5, %v164_v6  ;;  %v1687_v11 = vcombine.low (%p92_p12), %v160_v5, %v164_v6  ;;  %v152_v13 = vld [vmem:[#allocation8 + $0x8] sm:$0xff] (%p92_p12)  ;;  %v2384_v44 = vshrl.u32 (%p92_p12), %v169_v43, 7 }
  0x4d   :  { %106 = vst [vmem:[#allocation13 + $0x20] sm:$0xff] (%p92_p12), %v2244_v3  ;;  %107 = vst [vmem:[#allocation13 + $0x28] sm:$0xff] (%p92_p12), %v2244_v3  ;;  %v1686_v4 = vcombine.high (%p92_p12), %v159_v1, %v163_v2  ;;  %v1685_v7 = vcombine.low (%p92_p12), %v159_v1, %v163_v2  ;;  %v151_v8 = vld [vmem:[#allocation8] sm:$0xff] (%p92_p12)  ;;  %v156_v14 = vld [vmem:[#allocation8 + $0x28] sm:$0xff] (%p92_p12) }
  0x4e   : > { %p100_p11 = scmp.gt.s32.totalorder %s2203_s5, %s99_s11  ;;  %94 = sbr.rel (!%p92_p12) target bundleno = 72 (0x48), region = 93  ;;  %108 = vst [vmem:[#allocation13 + $0x30] sm:$0xff] (%p92_p12), %v2244_v3  ;;  %109 = vst [vmem:[#allocation13 + $0x38] sm:$0xff] (%p92_p12), %v2244_v3  ;;  %v155_v12 = vld [vmem:[#allocation8 + $0x20] sm:$0xff] (%p92_p12)  ;;  %v1680_v16 = vcombine.high (%p92_p12), %v152_v13, %v156_v14  ;;  %479 = vmatprep.subr.bf16.mxu1 (%p92_p12), %v1688_v10  ;;  %v165_v19 = vld [vmem:[#allocation8 + $0x70] sm:$0xff] (%p92_p12)  ;;  %v1679_v21 = vcombine.low (%p92_p12), %v152_v13, %v156_v14  ;;  %v171_v45 = vsub.s32 (%p92_p12), 0, %v2384_v44 }
  0x4f   :  { %110 = vst [vmem:[#allocation13 + $0x40] sm:$0xff] (%p92_p12), %v2244_v3  ;;  %111 = vst [vmem:[#allocation13 + $0x48] sm:$0xff] (%p92_p12), %v2244_v3  ;;  %366 = vmatprep.subr.bf16.mxu0 (%p92_p12), %v1686_v4  ;;  %v1678_v15 = vcombine.high (%p92_p12), %v151_v8, %v155_v12  ;;  %v1677_v17 = vcombine.low (%p92_p12), %v151_v8, %v155_v12  ;;  %v162_v20 = vld [vmem:[#allocation8 + $0x58] sm:$0xff] (%p92_p12)  ;;  %480 = vmatpush1.bf16.msra.mxu1 (%p92_p12), %v1687_v11  ;;  %v1887_v25 = vld [vmem:[#allocation5] sm:$0xff] (%p92_p12)   ;;  %v179_v47 = vsub.s32 (%p92_p12), 2, %v2384_v44 }
  0x50   : > { %s2641_s5 = smov (!%p100_p11, %s2203_s5), %s99_s11  ;;  %112 = vst [vmem:[#allocation13 + $0x50] sm:$0xff] (%p92_p12), %v2244_v3  ;;  %113 = vst [vmem:[#allocation13 + $0x58] sm:$0xff] (%p92_p12), %v2244_v3  ;;  %367 = vmatpush1.bf16.msra.mxu0 (%p92_p12), %v1685_v7  ;;  %v1690_v22 = vcombine.high (%p92_p12), %v161_v18, %v165_v19  ;;  %v166_v23 = vld [vmem:[#allocation8 + $0x78] sm:$0xff] (%p92_p12)  ;;  %481 = vmatprep.subr.bf16.mxu1 (%p92_p12), %v1680_v16  ;;  %v1689_v26 = vcombine.low (%p92_p12), %v161_v18, %v165_v19  ;;  %v153_v28 = vld [vmem:[#allocation8 + $0x10] sm:$0xff] (%p92_p12)  ;;  %v175_v48 = vsub.s32 (%p92_p12), 1, %v2384_v44 }
  0x51   : > { %s2639_s12 = smov %s2641_s5  ;;  %114 = vst [vmem:[#allocation13 + $0x60] sm:$0xff] (%p92_p12), %v2244_v3  ;;  %115 = vst [vmem:[#allocation13 + $0x68] sm:$0xff] (%p92_p12), %v2244_v3  ;;  %368 = vmatprep.subr.bf16.mxu0 (%p92_p12), %v1678_v15  ;;  %v1692_v24 = vcombine.high (%p92_p12), %v162_v20, %v166_v23  ;;  %v1691_v27 = vcombine.low (%p92_p12), %v162_v20, %v166_v23  ;;  %v157_v29 = vld [vmem:[#allocation8 + $0x30] sm:$0xff] (%p92_p12)  ;;  %v154_v31 = vld [vmem:[#allocation8 + $0x18] sm:$0xff] (%p92_p12)  ;;  %v183_v49 = vsub.s32 (%p92_p12), 3, %v2384_v44 }
  0x52   : > { %s2202_s5 = smov %s2639_s12   ;;  %116 = vst [vmem:[#allocation13 + $0x70] sm:$0xff] (%p92_p12), %v2244_v3  ;;  %117 = vst [vmem:[#allocation13 + $0x78] sm:$0xff] (%p92_p12), %v2244_v3  ;;  %v1682_v30 = vcombine.high (%p92_p12), %v153_v28, %v157_v29  ;;  %v158_v32 = vld [vmem:[#allocation8 + $0x38] sm:$0xff] (%p92_p12)  ;;  %v1681_v34 = vcombine.low (%p92_p12), %v153_v28, %v157_v29  ;;  %v1888_v36 = vld [vmem:[#allocation5 + $0x8] sm:$0xff] (%p92_p12)   ;;  %p1725_p13 = scmp.le.s32.totalorder (%p92_p12), %s2639_s12, 0 }
  0x53   :  { %118 = vst [vmem:[#allocation14] sm:$0xff] %v2244_v3  ;;  %119 = vst [vmem:[#allocation14 + $0x8] sm:$0xff] %v2244_v3  ;;  %482 = vmatpush1.bf16.msra.mxu1 %v1679_v21  ;;  %v1684_v33 = vcombine.high %v154_v31, %v158_v32  ;;  %v1683_v35 = vcombine.low %v154_v31, %v158_v32  ;;  %v1889_v37 = vld [vmem:[#allocation5 + $0x10] sm:$0xff]   ;;  %v1890_v38 = vld [vmem:[#allocation5 + $0x18] sm:$0xff]  }
  0x54   :  { %120 = vst [vmem:[#allocation14 + $0x10] sm:$0xff] %v2244_v3  ;;  %121 = vst [vmem:[#allocation14 + $0x18] sm:$0xff] %v2244_v3  ;;  %369 = vmatpush1.bf16.msra.mxu0 %v1677_v17  ;;  %705 = vmatprep.subr.bf16.mxu1 %v1692_v24  ;;  %v1891_v39 = vld [vmem:[#allocation5 + $0x20] sm:$0xff]   ;;  %v1892_v40 = vld [vmem:[#allocation5 + $0x28] sm:$0xff]  }
  0x55   :  { %122 = vst [vmem:[#allocation14 + $0x20] sm:$0xff] %v2244_v3  ;;  %123 = vst [vmem:[#allocation14 + $0x28] sm:$0xff] %v2244_v3  ;;  %592 = vmatprep.subr.bf16.mxu0 %v1690_v22  ;;  %v1893_v41 = vld [vmem:[#allocation5 + $0x30] sm:$0xff]   ;;  %v1894_v42 = vld [vmem:[#allocation5 + $0x38] sm:$0xff]  }
  0x56   :  { %124 = vst [vmem:[#allocation14 + $0x30] sm:$0xff] %v2244_v3  ;;  %125 = vst [vmem:[#allocation14 + $0x38] sm:$0xff] %v2244_v3  ;;  %1701 = vmatmul.mubr.msk.bf16.vlgmr.msra.gmra.mxu1 %vm329_vm0, %v1887_v25  ;;  %v2390_v46 = vld [vmem:[%s2634_s4] sm:$0xff]  ;;  %s2558_s4 = smov (!%p1725_p13), 0  }
  0x57   :  { %126 = vst [vmem:[#allocation14 + $0x40] sm:$0xff] %v2244_v3  ;;  %127 = vst [vmem:[#allocation14 + $0x48] sm:$0xff] %v2244_v3  ;;  %1693 = vmatmul.mubr.msk.bf16.vlgmr.msra.gmra.mxu0 %vm329_vm0, %v1887_v25  ;;  %706 = vmatpush1.bf16.msra.mxu1 %v1691_v27  ;;  %v2396_v50 = vrot.slane %v2390_v46, %v171_v45  ;;  %v2399_v51 = vrot.slane %v2390_v46, %v179_v47 }
  0x58   :  { %128 = vst [vmem:[#allocation14 + $0x50] sm:$0xff] %v2244_v3  ;;  %129 = vst [vmem:[#allocation14 + $0x58] sm:$0xff] %v2244_v3  ;;  %593 = vmatpush1.bf16.msra.mxu0 %v1689_v26  ;;  %396 = vmatprep.mubr.bf16.mxu0 %v2245_v9  ;;  %v2402_v52 = vrot.slane %v2390_v46, %v175_v48  ;;  %v2405_v54 = vrot.slane %v2390_v46, %v183_v49 }
  0x59   :  { %130 = vst [vmem:[#allocation14 + $0x60] sm:$0xff] %v2244_v3  ;;  %131 = vst [vmem:[#allocation14 + $0x68] sm:$0xff] %v2244_v3  ;;  %509 = vmatprep.mubr.bf16.mxu1 %v2245_v9  ;;  %594 = vmatprep.subr.bf16.mxu0 %v1682_v30 }
  0x5a   :  { %132 = vst [vmem:[#allocation14 + $0x70] sm:$0xff] %v2244_v3  ;;  %133 = vst [vmem:[#allocation14 + $0x78] sm:$0xff] %v2244_v3  ;;  %707 = vmatprep.subr.bf16.mxu1 %v1684_v33 }
  0x5b   :  { %708 = vmatpush1.bf16.msra.mxu1 %v1683_v35 }
  0x5c   :  { %595 = vmatpush1.bf16.msra.mxu0 %v1681_v34 }
  0x5e   :  { %1702 = vmatmul.mubr.msk.bf16.gmra.mxu1 %vm329_vm0, %v1888_v36 }
  0x5f   :  { %1694 = vmatmul.mubr.msk.bf16.gmra.mxu0 %vm329_vm0, %v1888_v36  ;;  %519 = vmatprep.mubr.bf16.mxu1 %v2245_v9 }
  0x60   :  { %406 = vmatprep.mubr.bf16.mxu0 %v2245_v9 }
  0x66   :  { %1703 = vmatmul.mubr.msk.bf16.gmra.mxu1 %vm329_vm0, %v1889_v37 }
  0x67   :  { %1695 = vmatmul.mubr.msk.bf16.gmra.mxu0 %vm329_vm0, %v1889_v37  ;;  %529 = vmatprep.mubr.bf16.mxu1 %v2245_v9 }
  0x68   :  { %416 = vmatprep.mubr.bf16.mxu0 %v2245_v9 }
  0x6e   :  { %1704 = vmatmul.mubr.msk.bf16.gmra.mxu1 %vm329_vm0, %v1890_v38 }
  0x6f   :  { %1696 = vmatmul.mubr.msk.bf16.gmra.mxu0 %vm329_vm0, %v1890_v38  ;;  %539 = vmatprep.mubr.bf16.mxu1 %v2245_v9 }
  0x70   :  { %426 = vmatprep.mubr.bf16.mxu0 %v2245_v9 }
  0x76   :  { %1705 = vmatmul.mubr.msk.bf16.gmra.mxu1 %vm329_vm0, %v1891_v39 }
  0x77   :  { %1697 = vmatmul.mubr.msk.bf16.gmra.mxu0 %vm329_vm0, %v1891_v39  ;;  %549 = vmatprep.mubr.bf16.mxu1 %v2245_v9 }
  0x78   :  { %436 = vmatprep.mubr.bf16.mxu0 %v2245_v9 }
  0x7e   :  { %1706 = vmatmul.mubr.msk.bf16.gmra.mxu1 %vm329_vm0, %v1892_v40 }
  0x7f   :  { %1698 = vmatmul.mubr.msk.bf16.gmra.mxu0 %vm329_vm0, %v1892_v40  ;;  %559 = vmatprep.mubr.bf16.mxu1 %v2245_v9 }
  0x80   :  { %446 = vmatprep.mubr.bf16.mxu0 %v2245_v9 }
  0x86   :  { %1707 = vmatmul.mubr.msk.bf16.gmra.mxu1 %vm329_vm0, %v1893_v41 }
  0x87   :  { %1699 = vmatmul.mubr.msk.bf16.gmra.mxu0 %vm329_vm0, %v1893_v41  ;;  %569 = vmatprep.mubr.bf16.mxu1 %v2245_v9 }
  0x88   :  { %456 = vmatprep.mubr.bf16.mxu0 %v2245_v9 }
  0x8e   :  { %1708 = vmatmul.mubr.msk.bf16.gmra.mxu1 %vm329_vm0, %v1894_v42 }
  0x8f   :  { %1700 = vmatmul.mubr.msk.bf16.gmra.mxu0 %vm329_vm0, %v1894_v42  ;;  %725 = vmatprep.mubr.bf16.mxu1 %v2245_v9 }
  0x90   :  { %612 = vmatprep.mubr.bf16.mxu0 %v2245_v9 }
  0x96   :  { %1717 = vmatmul.mubr.msk.bf16.vlgmr.msra.gmra.mxu1 %vm329_vm0, %v1887_v25 }
  0x97   :  { %1709 = vmatmul.mubr.msk.bf16.vlgmr.msra.gmra.mxu0 %vm329_vm0, %v1887_v25  ;;  %735 = vmatprep.mubr.bf16.mxu1 %v2245_v9 }
  0x98   :  { %622 = vmatprep.mubr.bf16.mxu0 %v2245_v9 }
  0x9e   :  { %1718 = vmatmul.mubr.msk.bf16.gmra.mxu1 %vm329_vm0, %v1888_v36 }
  0x9f   :  { %1710 = vmatmul.mubr.msk.bf16.gmra.mxu0 %vm329_vm0, %v1888_v36  ;;  %745 = vmatprep.mubr.bf16.mxu1 %v2245_v9 }
  0xa0   :  { %632 = vmatprep.mubr.bf16.mxu0 %v2245_v9 }
  0xa6   :  { %1719 = vmatmul.mubr.msk.bf16.gmra.mxu1 %vm329_vm0, %v1889_v37 }
  0xa7   :  { %1711 = vmatmul.mubr.msk.bf16.gmra.mxu0 %vm329_vm0, %v1889_v37  ;;  %755 = vmatprep.mubr.bf16.mxu1 %v2245_v9 }
  0xa8   :  { %642 = vmatprep.mubr.bf16.mxu0 %v2245_v9 }
  0xae   :  { %1720 = vmatmul.mubr.msk.bf16.gmra.mxu1 %vm329_vm0, %v1890_v38 }
  0xaf   :  { %1712 = vmatmul.mubr.msk.bf16.gmra.mxu0 %vm329_vm0, %v1890_v38  ;;  %765 = vmatprep.mubr.bf16.mxu1 %v2245_v9 }
  0xb0   :  { %652 = vmatprep.mubr.bf16.mxu0 %v2245_v9 }
  0xb6   :  { %1721 = vmatmul.mubr.msk.bf16.gmra.mxu1 %vm329_vm0, %v1891_v39 }
  0xb7   :  { %1713 = vmatmul.mubr.msk.bf16.gmra.mxu0 %vm329_vm0, %v1891_v39  ;;  %775 = vmatprep.mubr.bf16.mxu1 %v2245_v9 }
  0xb8   :  { %662 = vmatprep.mubr.bf16.mxu0 %v2245_v9 }
  0xbe   :  { %1722 = vmatmul.mubr.msk.bf16.gmra.mxu1 %vm329_vm0, %v1892_v40 }
  0xbf   :  { %1714 = vmatmul.mubr.msk.bf16.gmra.mxu0 %vm329_vm0, %v1892_v40  ;;  %785 = vmatprep.mubr.bf16.mxu1 %v2245_v9 }
  0xc0   :  { %672 = vmatprep.mubr.bf16.mxu0 %v2245_v9 }
  0xc6   :  { %1723 = vmatmul.mubr.msk.bf16.gmra.mxu1 %vm329_vm0, %v1893_v41 }
  0xc7   :  { %1715 = vmatmul.mubr.msk.bf16.gmra.mxu0 %vm329_vm0, %v1893_v41  ;;  %795 = vmatprep.mubr.bf16.mxu1 %v2245_v9 }
  0xc8   :  { %682 = vmatprep.mubr.bf16.mxu0 %v2245_v9 }
  0xce   :  { %1724 = vmatmul.mubr.msk.bf16.gmra.mxu1 %vm329_vm0, %v1894_v42 }
  0xcf   :  { %1716 = vmatmul.mubr.msk.bf16.gmra.mxu0 %vm329_vm0, %v1894_v42 }
 0x116   :  { %v501_v56 = vpop.f32.mrf.mxu1 }
 0x117   :  { %v388_v53 = vpop.f32.mrf.mxu0  ;;  %v502_v57 = vadd.f32 %v501_v56, %v2399_v51 }
 0x118   :  { %v389_v55 = vadd.f32 %v388_v53, %v2396_v50  ;;  %v503_v60 = vpop.f32.mrf.mxu1 }
 0x119   :  { %v390_v58 = vpop.f32.mrf.mxu0  ;;  %808 = vst [vmem:[#allocation2 + $0x10] sm:$0xff] %v502_v57  ;;  %v504_v61 = vadd.f32 %v503_v60, %v2405_v54 }
 0x11a   :  { %806 = vst [vmem:[#allocation2] sm:$0xff] %v389_v55  ;;  %v391_v59 = vadd.f32 %v390_v58, %v2402_v52  ;;  %v505_v1 = vpop.f32.mrf.mxu1 }
 0x11b   :  { %v392_v62 = vpop.f32.mrf.mxu0  ;;  %809 = vst [vmem:[#allocation2 + $0x18] sm:$0xff] %v504_v61  ;;  %v506_v2 = vadd.f32 %v505_v1, %v2399_v51 }
 0x11c   :  { %807 = vst [vmem:[#allocation2 + $0x8] sm:$0xff] %v391_v59  ;;  %v393_v63 = vadd.f32 %v392_v62, %v2396_v50  ;;  %v507_v5 = vpop.f32.mrf.mxu1 }
 0x11d   :  { %v394_v3 = vpop.f32.mrf.mxu0  ;;  %816 = vst [vmem:[#allocation2 + $0x50] sm:$0xff] %v506_v2  ;;  %v508_v6 = vadd.f32 %v507_v5, %v2405_v54 }
 0x11e   :  { %814 = vst [vmem:[#allocation2 + $0x40] sm:$0xff] %v393_v63  ;;  %v395_v4 = vadd.f32 %v394_v3, %v2402_v52  ;;  %v511_v9 = vpop.f32.mrf.mxu1 }
 0x11f   :  { %v398_v7 = vpop.f32.mrf.mxu0  ;;  %817 = vst [vmem:[#allocation2 + $0x58] sm:$0xff] %v508_v6  ;;  %v512_v10 = vadd.f32 %v511_v9, %v2399_v51 }
 0x120   :  { %815 = vst [vmem:[#allocation2 + $0x48] sm:$0xff] %v395_v4  ;;  %v399_v8 = vadd.f32 %v398_v7, %v2396_v50  ;;  %v513_v13 = vpop.f32.mrf.mxu1 }
 0x121   :  { %v400_v11 = vpop.f32.mrf.mxu0  ;;  %824 = vst [vmem:[#allocation2 + $0x90] sm:$0xff] %v512_v10  ;;  %v514_v14 = vadd.f32 %v513_v13, %v2405_v54 }
 0x122   :  { %822 = vst [vmem:[#allocation2 + $0x80] sm:$0xff] %v399_v8  ;;  %v401_v12 = vadd.f32 %v400_v11, %v2402_v52  ;;  %v515_v17 = vpop.f32.mrf.mxu1 }
 0x123   :  { %v402_v15 = vpop.f32.mrf.mxu0  ;;  %825 = vst [vmem:[#allocation2 + $0x98] sm:$0xff] %v514_v14  ;;  %v516_v18 = vadd.f32 %v515_v17, %v2399_v51 }
 0x124   :  { %823 = vst [vmem:[#allocation2 + $0x88] sm:$0xff] %v401_v12  ;;  %v403_v16 = vadd.f32 %v402_v15, %v2396_v50  ;;  %v517_v21 = vpop.f32.mrf.mxu1 }
 0x125   :  { %v404_v19 = vpop.f32.mrf.mxu0  ;;  %832 = vst [vmem:[#allocation2 + $0xd0] sm:$0xff] %v516_v18  ;;  %v518_v22 = vadd.f32 %v517_v21, %v2405_v54 }
 0x126   :  { %830 = vst [vmem:[#allocation2 + $0xc0] sm:$0xff] %v403_v16  ;;  %v405_v20 = vadd.f32 %v404_v19, %v2402_v52  ;;  %v521_v25 = vpop.f32.mrf.mxu1 }
 0x127   :  { %v408_v23 = vpop.f32.mrf.mxu0  ;;  %833 = vst [vmem:[#allocation2 + $0xd8] sm:$0xff] %v518_v22  ;;  %v522_v26 = vadd.f32 %v521_v25, %v2399_v51 }
 0x128   :  { %831 = vst [vmem:[#allocation2 + $0xc8] sm:$0xff] %v405_v20  ;;  %v409_v24 = vadd.f32 %v408_v23, %v2396_v50  ;;  %v523_v29 = vpop.f32.mrf.mxu1 }
 0x129   :  { %v410_v27 = vpop.f32.mrf.mxu0  ;;  %840 = vst [vmem:[#allocation2 + $0x110] sm:$0xff] %v522_v26  ;;  %v524_v30 = vadd.f32 %v523_v29, %v2405_v54 }
 0x12a   :  { %838 = vst [vmem:[#allocation2 + $0x100] sm:$0xff] %v409_v24  ;;  %v411_v28 = vadd.f32 %v410_v27, %v2402_v52  ;;  %v525_v33 = vpop.f32.mrf.mxu1 }
 0x12b   :  { %v412_v31 = vpop.f32.mrf.mxu0  ;;  %841 = vst [vmem:[#allocation2 + $0x118] sm:$0xff] %v524_v30  ;;  %v526_v34 = vadd.f32 %v525_v33, %v2399_v51 }
 0x12c   :  { %839 = vst [vmem:[#allocation2 + $0x108] sm:$0xff] %v411_v28  ;;  %v413_v32 = vadd.f32 %v412_v31, %v2396_v50  ;;  %v527_v37 = vpop.f32.mrf.mxu1 }
 0x12d   :  { %v414_v35 = vpop.f32.mrf.mxu0  ;;  %848 = vst [vmem:[#allocation2 + $0x150] sm:$0xff] %v526_v34  ;;  %v528_v38 = vadd.f32 %v527_v37, %v2405_v54 }
 0x12e   :  { %846 = vst [vmem:[#allocation2 + $0x140] sm:$0xff] %v413_v32  ;;  %v415_v36 = vadd.f32 %v414_v35, %v2402_v52  ;;  %v531_v41 = vpop.f32.mrf.mxu1 }
 0x12f   :  { %v418_v39 = vpop.f32.mrf.mxu0  ;;  %849 = vst [vmem:[#allocation2 + $0x158] sm:$0xff] %v528_v38  ;;  %v532_v42 = vadd.f32 %v531_v41, %v2399_v51 }
 0x130   :  { %847 = vst [vmem:[#allocation2 + $0x148] sm:$0xff] %v415_v36  ;;  %v419_v40 = vadd.f32 %v418_v39, %v2396_v50  ;;  %v533_v47 = vpop.f32.mrf.mxu1 }
 0x131   :  { %v420_v43 = vpop.f32.mrf.mxu0  ;;  %856 = vst [vmem:[#allocation2 + $0x190] sm:$0xff] %v532_v42  ;;  %v534_v48 = vadd.f32 %v533_v47, %v2405_v54 }
 0x132   :  { %854 = vst [vmem:[#allocation2 + $0x180] sm:$0xff] %v419_v40  ;;  %v421_v45 = vadd.f32 %v420_v43, %v2402_v52  ;;  %v535_v55 = vpop.f32.mrf.mxu1 }
 0x133   :  { %v422_v49 = vpop.f32.mrf.mxu0  ;;  %857 = vst [vmem:[#allocation2 + $0x198] sm:$0xff] %v534_v48  ;;  %v536_v56 = vadd.f32 %v535_v55, %v2399_v51  ;;  %v187_v55 = vsub.s32 4, %v2384_v44 }
 0x134   :  { %855 = vst [vmem:[#allocation2 + $0x188] sm:$0xff] %v421_v45  ;;  %v423_v53 = vadd.f32 %v422_v49, %v2396_v50  ;;  %v537_v59 = vpop.f32.mrf.mxu1 }
 0x135   :  { %v424_v57 = vpop.f32.mrf.mxu0  ;;  %864 = vst [vmem:[#allocation2 + $0x1d0] sm:$0xff] %v536_v56  ;;  %v538_v60 = vadd.f32 %v537_v59, %v2405_v54 }
 0x136   :  { %862 = vst [vmem:[#allocation2 + $0x1c0] sm:$0xff] %v423_v53  ;;  %v425_v58 = vadd.f32 %v424_v57, %v2402_v52  ;;  %v541_v63 = vpop.f32.mrf.mxu1 }
 0x137   :  { %v428_v61 = vpop.f32.mrf.mxu0  ;;  %865 = vst [vmem:[#allocation2 + $0x1d8] sm:$0xff] %v538_v60  ;;  %v542_v1 = vadd.f32 %v541_v63, %v2399_v51 }
 0x138   :  { %863 = vst [vmem:[#allocation2 + $0x1c8] sm:$0xff] %v425_v58  ;;  %v429_v62 = vadd.f32 %v428_v61, %v2396_v50  ;;  %v543_v4 = vpop.f32.mrf.mxu1  ;;  %v195_v58 = vsub.s32 6, %v2384_v44  ;;  %v191_v61 = vsub.s32 5, %v2384_v44 }
 0x139   :  { %v430_v2 = vpop.f32.mrf.mxu0  ;;  %872 = vst [vmem:[#allocation2 + $0x210] sm:$0xff] %v542_v1  ;;  %v544_v5 = vadd.f32 %v543_v4, %v2405_v54  ;;  %v199_v1 = vsub.s32 7, %v2384_v44  ;;  %v2473_v4 = vrot.slane %v2390_v46, %v187_v55 }
 0x13a   :  { %870 = vst [vmem:[#allocation2 + $0x200] sm:$0xff] %v429_v62  ;;  %v431_v3 = vadd.f32 %v430_v2, %v2402_v52  ;;  %v545_v8 = vpop.f32.mrf.mxu1  ;;  %v2481_v44 = vrot.slane %v2390_v46, %v191_v61 }
 0x13b   :  { %v432_v6 = vpop.f32.mrf.mxu0  ;;  %873 = vst [vmem:[#allocation2 + $0x218] sm:$0xff] %v544_v5  ;;  %v546_v9 = vadd.f32 %v545_v8, %v2399_v51 }
 0x13c   :  { %871 = vst [vmem:[#allocation2 + $0x208] sm:$0xff] %v431_v3  ;;  %v433_v7 = vadd.f32 %v432_v6, %v2396_v50  ;;  %v547_v12 = vpop.f32.mrf.mxu1 }
 0x13d   :  { %v434_v10 = vpop.f32.mrf.mxu0  ;;  %880 = vst [vmem:[#allocation2 + $0x250] sm:$0xff] %v546_v9  ;;  %v548_v13 = vadd.f32 %v547_v12, %v2405_v54 }
 0x13e   :  { %878 = vst [vmem:[#allocation2 + $0x240] sm:$0xff] %v433_v7  ;;  %v435_v11 = vadd.f32 %v434_v10, %v2402_v52  ;;  %v551_v16 = vpop.f32.mrf.mxu1  ;;  %v2477_v7 = vrot.slane %v2390_v46, %v195_v58 }
 0x13f   :  { %v438_v14 = vpop.f32.mrf.mxu0  ;;  %881 = vst [vmem:[#allocation2 + $0x258] sm:$0xff] %v548_v13  ;;  %v552_v17 = vadd.f32 %v551_v16, %v2399_v51 }
 0x140   :  { %879 = vst [vmem:[#allocation2 + $0x248] sm:$0xff] %v435_v11  ;;  %v439_v15 = vadd.f32 %v438_v14, %v2396_v50  ;;  %v553_v20 = vpop.f32.mrf.mxu1  ;;  %v2485_v11 = vrot.slane %v2390_v46, %v199_v1 }
 0x141   :  { %v440_v18 = vpop.f32.mrf.mxu0  ;;  %888 = vst [vmem:[#allocation2 + $0x290] sm:$0xff] %v552_v17  ;;  %v554_v21 = vadd.f32 %v553_v20, %v2405_v54 }
 0x142   :  { %886 = vst [vmem:[#allocation2 + $0x280] sm:$0xff] %v439_v15  ;;  %v441_v19 = vadd.f32 %v440_v18, %v2402_v52  ;;  %v555_v24 = vpop.f32.mrf.mxu1 }
 0x143   :  { %v442_v22 = vpop.f32.mrf.mxu0  ;;  %889 = vst [vmem:[#allocation2 + $0x298] sm:$0xff] %v554_v21  ;;  %v556_v25 = vadd.f32 %v555_v24, %v2399_v51 }
 0x144   :  { %887 = vst [vmem:[#allocation2 + $0x288] sm:$0xff] %v441_v19  ;;  %v443_v23 = vadd.f32 %v442_v22, %v2396_v50  ;;  %v557_v28 = vpop.f32.mrf.mxu1 }
 0x145   :  { %v444_v26 = vpop.f32.mrf.mxu0  ;;  %896 = vst [vmem:[#allocation2 + $0x2d0] sm:$0xff] %v556_v25  ;;  %v558_v29 = vadd.f32 %v557_v28, %v2405_v54 }
 0x146   :  { %894 = vst [vmem:[#allocation2 + $0x2c0] sm:$0xff] %v443_v23  ;;  %v445_v27 = vadd.f32 %v444_v26, %v2402_v52  ;;  %v561_v32 = vpop.f32.mrf.mxu1 }
 0x147   :  { %v448_v30 = vpop.f32.mrf.mxu0  ;;  %897 = vst [vmem:[#allocation2 + $0x2d8] sm:$0xff] %v558_v29  ;;  %v562_v33 = vadd.f32 %v561_v32, %v2399_v51 }
 0x148   :  { %895 = vst [vmem:[#allocation2 + $0x2c8] sm:$0xff] %v445_v27  ;;  %v449_v31 = vadd.f32 %v448_v30, %v2396_v50  ;;  %v563_v36 = vpop.f32.mrf.mxu1 }
 0x149   :  { %v450_v34 = vpop.f32.mrf.mxu0  ;;  %904 = vst [vmem:[#allocation2 + $0x310] sm:$0xff] %v562_v33  ;;  %v564_v37 = vadd.f32 %v563_v36, %v2405_v54 }
 0x14a   :  { %902 = vst [vmem:[#allocation2 + $0x300] sm:$0xff] %v449_v31  ;;  %v451_v35 = vadd.f32 %v450_v34, %v2402_v52  ;;  %v565_v40 = vpop.f32.mrf.mxu1 }
 0x14b   :  { %v452_v38 = vpop.f32.mrf.mxu0  ;;  %905 = vst [vmem:[#allocation2 + $0x318] sm:$0xff] %v564_v37  ;;  %v566_v41 = vadd.f32 %v565_v40, %v2399_v51 }
 0x14c   :  { %903 = vst [vmem:[#allocation2 + $0x308] sm:$0xff] %v451_v35  ;;  %v453_v39 = vadd.f32 %v452_v38, %v2396_v50  ;;  %v567_v45 = vpop.f32.mrf.mxu1 }
 0x14d   :  { %v454_v42 = vpop.f32.mrf.mxu0  ;;  %912 = vst [vmem:[#allocation2 + $0x350] sm:$0xff] %v566_v41  ;;  %v568_v47 = vadd.f32 %v567_v45, %v2405_v54 }
 0x14e   :  { %910 = vst [vmem:[#allocation2 + $0x340] sm:$0xff] %v453_v39  ;;  %v455_v43 = vadd.f32 %v454_v42, %v2402_v52  ;;  %v571_v53 = vpop.f32.mrf.mxu1 }
 0x14f   :  { %v458_v48 = vpop.f32.mrf.mxu0  ;;  %913 = vst [vmem:[#allocation2 + $0x358] sm:$0xff] %v568_v47  ;;  %v572_v56 = vadd.f32 %v571_v53, %v2399_v51 }
 0x150   :  { %911 = vst [vmem:[#allocation2 + $0x348] sm:$0xff] %v455_v43  ;;  %v459_v49 = vadd.f32 %v458_v48, %v2396_v50  ;;  %v573_v60 = vpop.f32.mrf.mxu1 }
 0x151   :  { %v460_v57 = vpop.f32.mrf.mxu0  ;;  %920 = vst [vmem:[#allocation2 + $0x390] sm:$0xff] %v572_v56  ;;  %v574_v62 = vadd.f32 %v573_v60, %v2405_v54 }
 0x152   :  { %918 = vst [vmem:[#allocation2 + $0x380] sm:$0xff] %v459_v49  ;;  %v461_v59 = vadd.f32 %v460_v57, %v2402_v52  ;;  %v575_v3 = vpop.f32.mrf.mxu1 }
 0x153   :  { %v462_v63 = vpop.f32.mrf.mxu0  ;;  %921 = vst [vmem:[#allocation2 + $0x398] sm:$0xff] %v574_v62  ;;  %v576_v5 = vadd.f32 %v575_v3, %v2399_v51 }
 0x154   :  { %919 = vst [vmem:[#allocation2 + $0x388] sm:$0xff] %v461_v59  ;;  %v463_v2 = vadd.f32 %v462_v63, %v2396_v50  ;;  %v577_v9 = vpop.f32.mrf.mxu1 }
 0x155   :  { %v464_v6 = vpop.f32.mrf.mxu0  ;;  %928 = vst [vmem:[#allocation2 + $0x3d0] sm:$0xff] %v576_v5  ;;  %v578_v50 = vadd.f32 %v577_v9, %v2405_v54 }
 0x156   :  { %926 = vst [vmem:[#allocation2 + $0x3c0] sm:$0xff] %v463_v2  ;;  %v465_v8 = vadd.f32 %v464_v6, %v2402_v52  ;;  %v727_v12 = vpop.f32.mrf.mxu1 }
 0x157   :  { %v614_v10 = vpop.f32.mrf.mxu0  ;;  %929 = vst [vmem:[#allocation2 + $0x3d8] sm:$0xff] %v578_v50  ;;  %v728_v13 = vadd.f32 %v727_v12, %v2477_v7 }
 0x158   :  { %927 = vst [vmem:[#allocation2 + $0x3c8] sm:$0xff] %v465_v8  ;;  %v615_v51 = vadd.f32 %v614_v10, %v2473_v4  ;;  %v729_v15 = vpop.f32.mrf.mxu1 }
 0x159   :  { %v616_v14 = vpop.f32.mrf.mxu0  ;;  %812 = vst [vmem:[#allocation2 + $0x30] sm:$0xff] %v728_v13  ;;  %v730_v16 = vadd.f32 %v729_v15, %v2485_v11 }
 0x15a   :  { %810 = vst [vmem:[#allocation2 + $0x20] sm:$0xff] %v615_v51  ;;  %v617_v52 = vadd.f32 %v616_v14, %v2481_v44  ;;  %v731_v17 = vpop.f32.mrf.mxu1 }
 0x15b   :  { %v618_v54 = vpop.f32.mrf.mxu0  ;;  %813 = vst [vmem:[#allocation2 + $0x38] sm:$0xff] %v730_v16  ;;  %v732_v18 = vadd.f32 %v731_v17, %v2477_v7 }
 0x15c   :  { %811 = vst [vmem:[#allocation2 + $0x28] sm:$0xff] %v617_v52  ;;  %v619_v46 = vadd.f32 %v618_v54, %v2473_v4  ;;  %v733_v21 = vpop.f32.mrf.mxu1 }
 0x15d   :  { %v620_v19 = vpop.f32.mrf.mxu0  ;;  %820 = vst [vmem:[#allocation2 + $0x70] sm:$0xff] %v732_v18  ;;  %v734_v22 = vadd.f32 %v733_v21, %v2485_v11 }
 0x15e   :  { %818 = vst [vmem:[#allocation2 + $0x60] sm:$0xff] %v619_v46  ;;  %v621_v20 = vadd.f32 %v620_v19, %v2481_v44  ;;  %v737_v25 = vpop.f32.mrf.mxu1 }
 0x15f   :  { %v624_v23 = vpop.f32.mrf.mxu0  ;;  %821 = vst [vmem:[#allocation2 + $0x78] sm:$0xff] %v734_v22  ;;  %v738_v26 = vadd.f32 %v737_v25, %v2477_v7 }
 0x160   :  { %819 = vst [vmem:[#allocation2 + $0x68] sm:$0xff] %v621_v20  ;;  %v625_v24 = vadd.f32 %v624_v23, %v2473_v4  ;;  %v739_v29 = vpop.f32.mrf.mxu1 }
 0x161   :  { %v626_v27 = vpop.f32.mrf.mxu0  ;;  %828 = vst [vmem:[#allocation2 + $0xb0] sm:$0xff] %v738_v26  ;;  %v740_v30 = vadd.f32 %v739_v29, %v2485_v11 }
 0x162   :  { %826 = vst [vmem:[#allocation2 + $0xa0] sm:$0xff] %v625_v24  ;;  %v627_v28 = vadd.f32 %v626_v27, %v2481_v44  ;;  %v741_v33 = vpop.f32.mrf.mxu1 }
 0x163   :  { %v628_v31 = vpop.f32.mrf.mxu0  ;;  %829 = vst [vmem:[#allocation2 + $0xb8] sm:$0xff] %v740_v30  ;;  %v742_v34 = vadd.f32 %v741_v33, %v2477_v7 }
 0x164   :  { %827 = vst [vmem:[#allocation2 + $0xa8] sm:$0xff] %v627_v28  ;;  %v629_v32 = vadd.f32 %v628_v31, %v2473_v4  ;;  %v743_v37 = vpop.f32.mrf.mxu1 }
 0x165   :  { %v630_v35 = vpop.f32.mrf.mxu0  ;;  %836 = vst [vmem:[#allocation2 + $0xf0] sm:$0xff] %v742_v34  ;;  %v744_v38 = vadd.f32 %v743_v37, %v2485_v11 }
 0x166   :  { %834 = vst [vmem:[#allocation2 + $0xe0] sm:$0xff] %v629_v32  ;;  %v631_v36 = vadd.f32 %v630_v35, %v2481_v44  ;;  %v747_v41 = vpop.f32.mrf.mxu1 }
 0x167   :  { %v634_v39 = vpop.f32.mrf.mxu0  ;;  %837 = vst [vmem:[#allocation2 + $0xf8] sm:$0xff] %v744_v38  ;;  %v748_v42 = vadd.f32 %v747_v41, %v2477_v7 }
 0x168   :  { %835 = vst [vmem:[#allocation2 + $0xe8] sm:$0xff] %v631_v36  ;;  %v635_v40 = vadd.f32 %v634_v39, %v2473_v4  ;;  %v749_v47 = vpop.f32.mrf.mxu1 }
 0x169   :  { %v636_v43 = vpop.f32.mrf.mxu0  ;;  %844 = vst [vmem:[#allocation2 + $0x130] sm:$0xff] %v748_v42  ;;  %v750_v48 = vadd.f32 %v749_v47, %v2485_v11 }
 0x16a   :  { %842 = vst [vmem:[#allocation2 + $0x120] sm:$0xff] %v635_v40  ;;  %v637_v45 = vadd.f32 %v636_v43, %v2481_v44  ;;  %v751_v55 = vpop.f32.mrf.mxu1 }
 0x16b   :  { %v638_v49 = vpop.f32.mrf.mxu0  ;;  %845 = vst [vmem:[#allocation2 + $0x138] sm:$0xff] %v750_v48  ;;  %v752_v56 = vadd.f32 %v751_v55, %v2477_v7 }
 0x16c   :  { %843 = vst [vmem:[#allocation2 + $0x128] sm:$0xff] %v637_v45  ;;  %v639_v53 = vadd.f32 %v638_v49, %v2473_v4  ;;  %v753_v59 = vpop.f32.mrf.mxu1 }
 0x16d   :  { %v640_v57 = vpop.f32.mrf.mxu0  ;;  %852 = vst [vmem:[#allocation2 + $0x170] sm:$0xff] %v752_v56  ;;  %v754_v60 = vadd.f32 %v753_v59, %v2485_v11 }
 0x16e   :  { %850 = vst [vmem:[#allocation2 + $0x160] sm:$0xff] %v639_v53  ;;  %v641_v58 = vadd.f32 %v640_v57, %v2481_v44  ;;  %v757_v63 = vpop.f32.mrf.mxu1 }
 0x16f   :  { %v644_v61 = vpop.f32.mrf.mxu0  ;;  %853 = vst [vmem:[#allocation2 + $0x178] sm:$0xff] %v754_v60  ;;  %v758_v1 = vadd.f32 %v757_v63, %v2477_v7 }
 0x170   :  { %851 = vst [vmem:[#allocation2 + $0x168] sm:$0xff] %v641_v58  ;;  %v645_v62 = vadd.f32 %v644_v61, %v2473_v4  ;;  %v759_v5 = vpop.f32.mrf.mxu1 }
 0x171   :  { %v646_v2 = vpop.f32.mrf.mxu0  ;;  %860 = vst [vmem:[#allocation2 + $0x1b0] sm:$0xff] %v758_v1  ;;  %v760_v6 = vadd.f32 %v759_v5, %v2485_v11 }
 0x172   :  { %858 = vst [vmem:[#allocation2 + $0x1a0] sm:$0xff] %v645_v62  ;;  %v647_v3 = vadd.f32 %v646_v2, %v2481_v44  ;;  %v761_v50 = vpop.f32.mrf.mxu1 }
 0x173   :  { %v648_v8 = vpop.f32.mrf.mxu0  ;;  %861 = vst [vmem:[#allocation2 + $0x1b8] sm:$0xff] %v760_v6  ;;  %v762_v10 = vadd.f32 %v761_v50, %v2477_v7 }
 0x174   :  { %859 = vst [vmem:[#allocation2 + $0x1a8] sm:$0xff] %v647_v3  ;;  %v649_v9 = vadd.f32 %v648_v8, %v2473_v4  ;;  %v763_v13 = vpop.f32.mrf.mxu1 }
 0x175   :  { %v650_v51 = vpop.f32.mrf.mxu0  ;;  %868 = vst [vmem:[#allocation2 + $0x1f0] sm:$0xff] %v762_v10  ;;  %v764_v14 = vadd.f32 %v763_v13, %v2485_v11 }
 0x176   :  { %866 = vst [vmem:[#allocation2 + $0x1e0] sm:$0xff] %v649_v9  ;;  %v651_v12 = vadd.f32 %v650_v51, %v2481_v44  ;;  %v767_v16 = vpop.f32.mrf.mxu1 }
 0x177   :  { %v654_v52 = vpop.f32.mrf.mxu0  ;;  %869 = vst [vmem:[#allocation2 + $0x1f8] sm:$0xff] %v764_v14  ;;  %v768_v54 = vadd.f32 %v767_v16, %v2477_v7 }
 0x178   :  { %867 = vst [vmem:[#allocation2 + $0x1e8] sm:$0xff] %v651_v12  ;;  %v655_v15 = vadd.f32 %v654_v52, %v2473_v4  ;;  %v769_v18 = vpop.f32.mrf.mxu1 }
 0x179   :  { %v656_v46 = vpop.f32.mrf.mxu0  ;;  %876 = vst [vmem:[#allocation2 + $0x230] sm:$0xff] %v768_v54  ;;  %v770_v19 = vadd.f32 %v769_v18, %v2485_v11 }
 0x17a   :  { %874 = vst [vmem:[#allocation2 + $0x220] sm:$0xff] %v655_v15  ;;  %v657_v17 = vadd.f32 %v656_v46, %v2481_v44  ;;  %v771_v22 = vpop.f32.mrf.mxu1 }
 0x17b   :  { %v658_v20 = vpop.f32.mrf.mxu0  ;;  %877 = vst [vmem:[#allocation2 + $0x238] sm:$0xff] %v770_v19  ;;  %v772_v23 = vadd.f32 %v771_v22, %v2477_v7 }
 0x17c   :  { %875 = vst [vmem:[#allocation2 + $0x228] sm:$0xff] %v657_v17  ;;  %v659_v21 = vadd.f32 %v658_v20, %v2473_v4  ;;  %v773_v26 = vpop.f32.mrf.mxu1 }
 0x17d   :  { %v660_v24 = vpop.f32.mrf.mxu0  ;;  %884 = vst [vmem:[#allocation2 + $0x270] sm:$0xff] %v772_v23  ;;  %v774_v27 = vadd.f32 %v773_v26, %v2485_v11 }
 0x17e   :  { %882 = vst [vmem:[#allocation2 + $0x260] sm:$0xff] %v659_v21  ;;  %v661_v25 = vadd.f32 %v660_v24, %v2481_v44  ;;  %v777_v30 = vpop.f32.mrf.mxu1 }
 0x17f   :  { %v664_v28 = vpop.f32.mrf.mxu0  ;;  %885 = vst [vmem:[#allocation2 + $0x278] sm:$0xff] %v774_v27  ;;  %v778_v31 = vadd.f32 %v777_v30, %v2477_v7 }
 0x180   :  { %883 = vst [vmem:[#allocation2 + $0x268] sm:$0xff] %v661_v25  ;;  %v665_v29 = vadd.f32 %v664_v28, %v2473_v4  ;;  %v779_v34 = vpop.f32.mrf.mxu1 }
 0x181   :  { %v666_v32 = vpop.f32.mrf.mxu0  ;;  %892 = vst [vmem:[#allocation2 + $0x2b0] sm:$0xff] %v778_v31  ;;  %v780_v35 = vadd.f32 %v779_v34, %v2485_v11 }
 0x182   :  { %890 = vst [vmem:[#allocation2 + $0x2a0] sm:$0xff] %v665_v29  ;;  %v667_v33 = vadd.f32 %v666_v32, %v2481_v44  ;;  %v781_v38 = vpop.f32.mrf.mxu1 }
 0x183   :  { %v668_v36 = vpop.f32.mrf.mxu0  ;;  %893 = vst [vmem:[#allocation2 + $0x2b8] sm:$0xff] %v780_v35  ;;  %v782_v39 = vadd.f32 %v781_v38, %v2477_v7 }
 0x184   :  { %891 = vst [vmem:[#allocation2 + $0x2a8] sm:$0xff] %v667_v33  ;;  %v669_v37 = vadd.f32 %v668_v36, %v2473_v4  ;;  %v783_v42 = vpop.f32.mrf.mxu1 }
 0x185   :  { %v670_v40 = vpop.f32.mrf.mxu0  ;;  %900 = vst [vmem:[#allocation2 + $0x2f0] sm:$0xff] %v782_v39  ;;  %v784_v43 = vadd.f32 %v783_v42, %v2485_v11 }
 0x186   :  { %898 = vst [vmem:[#allocation2 + $0x2e0] sm:$0xff] %v669_v37  ;;  %v671_v41 = vadd.f32 %v670_v40, %v2481_v44  ;;  %v787_v48 = vpop.f32.mrf.mxu1 }
 0x187   :  { %v674_v45 = vpop.f32.mrf.mxu0  ;;  %901 = vst [vmem:[#allocation2 + $0x2f8] sm:$0xff] %v784_v43  ;;  %v788_v49 = vadd.f32 %v787_v48, %v2477_v7 }
 0x188   :  { %899 = vst [vmem:[#allocation2 + $0x2e8] sm:$0xff] %v671_v41  ;;  %v675_v47 = vadd.f32 %v674_v45, %v2473_v4  ;;  %v789_v56 = vpop.f32.mrf.mxu1 }
 0x189   :  { %v676_v53 = vpop.f32.mrf.mxu0  ;;  %908 = vst [vmem:[#allocation2 + $0x330] sm:$0xff] %v788_v49  ;;  %v790_v57 = vadd.f32 %v789_v56, %v2485_v11 }
 0x18a   :  { %906 = vst [vmem:[#allocation2 + $0x320] sm:$0xff] %v675_v47  ;;  %v677_v55 = vadd.f32 %v676_v53, %v2481_v44  ;;  %v791_v60 = vpop.f32.mrf.mxu1 }
 0x18b   :  { %v678_v58 = vpop.f32.mrf.mxu0  ;;  %909 = vst [vmem:[#allocation2 + $0x338] sm:$0xff] %v790_v57  ;;  %v792_v61 = vadd.f32 %v791_v60, %v2477_v7 }
 0x18c   :  { %907 = vst [vmem:[#allocation2 + $0x328] sm:$0xff] %v677_v55  ;;  %v679_v59 = vadd.f32 %v678_v58, %v2473_v4  ;;  %v793_v1 = vpop.f32.mrf.mxu1 }
 0x18d   :  { %v680_v62 = vpop.f32.mrf.mxu0  ;;  %916 = vst [vmem:[#allocation2 + $0x370] sm:$0xff] %v792_v61  ;;  %v794_v2 = vadd.f32 %v793_v1, %v2485_v11 }
 0x18e   :  { %914 = vst [vmem:[#allocation2 + $0x360] sm:$0xff] %v679_v59  ;;  %v681_v63 = vadd.f32 %v680_v62, %v2481_v44  ;;  %v797_v6 = vpop.f32.mrf.mxu1 }
 0x18f   :  { %v684_v3 = vpop.f32.mrf.mxu0  ;;  %917 = vst [vmem:[#allocation2 + $0x378] sm:$0xff] %v794_v2  ;;  %v798_v8 = vadd.f32 %v797_v6, %v2477_v7 }
 0x190   :  { %915 = vst [vmem:[#allocation2 + $0x368] sm:$0xff] %v681_v63  ;;  %v685_v5 = vadd.f32 %v684_v3, %v2473_v4  ;;  %v799_v10 = vpop.f32.mrf.mxu1 }
 0x191   :  { %v686_v9 = vpop.f32.mrf.mxu0  ;;  %924 = vst [vmem:[#allocation2 + $0x3b0] sm:$0xff] %v798_v8  ;;  %v800_v51 = vadd.f32 %v799_v10, %v2485_v11 }
 0x192   :  { %922 = vst [vmem:[#allocation2 + $0x3a0] sm:$0xff] %v685_v5  ;;  %v687_v50 = vadd.f32 %v686_v9, %v2481_v44  ;;  %v801_v14 = vpop.f32.mrf.mxu1 }
 0x193   :  { %v688_v12 = vpop.f32.mrf.mxu0  ;;  %925 = vst [vmem:[#allocation2 + $0x3b8] sm:$0xff] %v800_v51  ;;  %v802_v52 = vadd.f32 %v801_v14, %v2477_v7 }
 0x194   :  { %923 = vst [vmem:[#allocation2 + $0x3a8] sm:$0xff] %v687_v50  ;;  %v689_v13 = vadd.f32 %v688_v12, %v2473_v4  ;;  %v803_v54 = vpop.f32.mrf.mxu1  ;;  %1651 = sbr.rel (%p1725_p13) target bundleno = 695 (0x2b7), region = 98 }
 0x195   :  { %v690_v15 = vpop.f32.mrf.mxu0  ;;  %932 = vst [vmem:[#allocation2 + $0x3f0] sm:$0xff] %v802_v52  ;;  %v804_v46 = vadd.f32 %v803_v54, %v2485_v11 }
 0x196   :  { %930 = vst [vmem:[#allocation2 + $0x3e0] sm:$0xff] %v689_v13  ;;  %v691_v16 = vadd.f32 %v690_v15, %v2481_v44 }
 0x197   :  { %933 = vst [vmem:[#allocation2 + $0x3f8] sm:$0xff] %v804_v46 }
 0x198   :  { %931 = vst [vmem:[#allocation2 + $0x3e8] sm:$0xff] %v691_v16 }
 0x199   :  { %v2554_v4 = vmov 0.0   ;;  %v2556_v17 = vmov 0.0  }
 0x19a LB: > { %v1896_v7 = vld [vmem:[#allocation10 + $0xe4] ss:$16 sps:$4 sm:$0xff]   ;;  %v1898_v44 = vld [vmem:[#allocation10 + $0xe0] ss:$16 sps:$4 sm:$0xff]   ;;  %v2246_v11 = vmov 0   ;;  %v1252_v19 = vstv %s2219_s4  ;;  %v949_v55 = vpack.c.bf16 %v2215_v17, %v2215_v17  ;;  %s1802_s15 = sshll.u32 %s2219_s4, 6  ;;  %s2219_s4 = sphi %s2558_s4, %s937_s4   ;;  %v2215_v17 = vphi %v2556_v17, %v1259_v17   ;;  %v2211_v4 = vphi %v2554_v4, %v1260_v4  }
 0x19b   : > { %1174 = vmatprep.mubr.bf16.mxu0 %v2246_v11  ;;  %1215 = vmatprep.mubr.bf16.mxu1 %v2246_v11  ;;  %v1899_v18 = vld [vmem:[#allocation10 + $0xc4] ss:$16 sps:$4 sm:$0xff]   ;;  %v1901_v20 = vld [vmem:[#allocation10 + $0xc0] ss:$16 sps:$4 sm:$0xff]   ;;  %vm1253_vm1 = vcmp.lt.s32.totalorder %v1252_v19, %v2318_v0  ;;  %v1907_v23 = vld [vmem:[#allocation10 + $0xec] ss:$16 sps:$4 sm:$0xff]  }
 0x19c   : > { %1142 = vmatprep.subr.bf16.mxu0 %v1896_v7  ;;  %1895 = vset.pattern.permute.xlu0 %v2246_v11  ;;  %v1902_v21 = vld [vmem:[#allocation10 + $0xa4] ss:$16 sps:$4 sm:$0xff]   ;;  %v1254_v22 = vsel %vm1253_vm1, 1, %v2246_v11  ;;  %v1910_v24 = vld [vmem:[#allocation10 + $0xe8] ss:$16 sps:$4 sm:$0xff]   ;;  %s944_s16 = scalar_lea.vmem [#allocation2], %s1802_s15 }
 0x19d   : > { %1143 = vmatpush1.bf16.msra.mxu0 %v1898_v44  ;;  %1256 = vperm.xlu0 %1895, %v1254_v22   ;;  %v1904_v25 = vld [vmem:[#allocation10 + $0xa0] ss:$16 sps:$4 sm:$0xff]   ;;  %v1905_v26 = vld [vmem:[#allocation10 + $0x84] ss:$16 sps:$4 sm:$0xff]   ;;  %v1913_v27 = vld [vmem:[#allocation10 + $0xcc] ss:$16 sps:$4 sm:$0xff]  }
 0x19e   : > { %1144 = vmatprep.subr.bf16.mxu0 %v1899_v18  ;;  %1183 = vmatprep.subr.bf16.mxu1 %v1907_v23  ;;  %v1916_v28 = vld [vmem:[#allocation10 + $0xc8] ss:$16 sps:$4 sm:$0xff]   ;;  %v1909_v29 = vld [vmem:[#allocation10 + $0x80] ss:$16 sps:$4 sm:$0xff]   ;;  %v1911_v30 = vld [vmem:[#allocation10 + $0x64] ss:$16 sps:$4 sm:$0xff]  }
 0x19f   : > { %1184 = vmatpush1.bf16.msra.mxu1 %v1910_v24  ;;  %v1919_v31 = vld [vmem:[#allocation10 + $0xac] ss:$16 sps:$4 sm:$0xff]   ;;  %v1922_v32 = vld [vmem:[#allocation10 + $0xa8] ss:$16 sps:$4 sm:$0xff]   ;;  %v1915_v34 = vld [vmem:[#allocation10 + $0x60] ss:$16 sps:$4 sm:$0xff]  }
 0x1a0   : > { %1185 = vmatprep.subr.bf16.mxu1 %v1913_v27  ;;  %v1925_v33 = vld [vmem:[#allocation10 + $0x8c] ss:$16 sps:$4 sm:$0xff]   ;;  %v1917_v35 = vld [vmem:[#allocation10 + $0x44] ss:$16 sps:$4 sm:$0xff]   ;;  %v1928_v36 = vld [vmem:[#allocation10 + $0x88] ss:$16 sps:$4 sm:$0xff]  }
 0x1a1   : > { %1145 = vmatpush1.bf16.msra.mxu0 %v1901_v20  ;;  %v1931_v37 = vld [vmem:[#allocation10 + $0x6c] ss:$16 sps:$4 sm:$0xff]   ;;  %v1921_v38 = vld [vmem:[#allocation10 + $0x40] ss:$16 sps:$4 sm:$0xff]   ;;  %v1923_v39 = vld [vmem:[#allocation10 + $0x24] ss:$16 sps:$4 sm:$0xff]  }
 0x1a2   : > { %1146 = vmatprep.subr.bf16.mxu0 %v1902_v21  ;;  %v1934_v40 = vld [vmem:[#allocation10 + $0x68] ss:$16 sps:$4 sm:$0xff]   ;;  %v1935_v41 = vld [vmem:[#allocation10 + $0x4c] ss:$16 sps:$4 sm:$0xff]   ;;  %v1927_v42 = vld [vmem:[#allocation10 + $0x20] ss:$16 sps:$4 sm:$0xff]  }
 0x1a3   : > { %1186 = vmatpush1.bf16.msra.mxu1 %v1916_v28  ;;  %v1929_v43 = vld [vmem:[#allocation10 + $0x4] ss:$16 sps:$4 sm:$0xff]   ;;  %v1937_v45 = vld [vmem:[#allocation10 + $0x48] ss:$16 sps:$4 sm:$0xff]   ;;  %v1938_v47 = vld [vmem:[#allocation10 + $0x2c] ss:$16 sps:$4 sm:$0xff]  }
 0x1a4   : > { %1187 = vmatprep.subr.bf16.mxu1 %v1919_v31  ;;  %v1933_v48 = vld [vmem:[#allocation10] ss:$16 sps:$4 sm:$0xff]   ;;  %v1940_v49 = vld [vmem:[#allocation10 + $0x28] ss:$16 sps:$4 sm:$0xff]   ;;  %v1941_v53 = vld [vmem:[#allocation10 + $0xc] ss:$16 sps:$4 sm:$0xff]  }
 0x1a5   : > { %1147 = vmatpush1.bf16.msra.mxu0 %v1904_v25  ;;  %v1943_v56 = vld [vmem:[#allocation10 + $0x8] ss:$16 sps:$4 sm:$0xff]   ;;  %v945_v57 = vld [vmem:[%s944_s16] sm:$0xff]  ;;  %v947_v8 = vld [vmem:[%s944_s16 + $0x10] sm:$0xff]  ;;  %s1726_s17 = sshll.u32 %s2219_s4, 3  ;;  %s937_s4 = sadd.s32 1, %s2219_s4  }
 0x1a6   : > { %1148 = vmatprep.subr.bf16.mxu0 %v1905_v26  ;;  %v946_v59 = vld [vmem:[%s944_s16 + $0x8] sm:$0xff]  ;;  %v948_v51 = vld [vmem:[%s944_s16 + $0x18] sm:$0xff]  ;;  %s1262_s18 = scalar_lea.vmem [#allocation13], %s1726_s17  ;;  %p936_p0 = scmp.ge.s32.totalorder %s937_s4, %s2639_s12 }
 0x1a7   : > { %1188 = vmatpush1.bf16.msra.mxu1 %v1922_v32 }
 0x1a8   : > { %1189 = vmatprep.subr.bf16.mxu1 %v1925_v33 }
 0x1a9   : > { %1149 = vmatpush1.bf16.msra.mxu0 %v1909_v29 }
 0x1aa   : > { %1150 = vmatprep.subr.bf16.mxu0 %v1911_v30 }
 0x1ab   : > { %1190 = vmatpush1.bf16.msra.mxu1 %v1928_v36 }
 0x1ac   : > { %1191 = vmatprep.subr.bf16.mxu1 %v1931_v37 }
 0x1ad   : > { %1151 = vmatpush1.bf16.msra.mxu0 %v1915_v34 }
 0x1ae   : > { %1152 = vmatprep.subr.bf16.mxu0 %v1917_v35 }
 0x1af   : > { %1192 = vmatpush1.bf16.msra.mxu1 %v1934_v40 }
 0x1b0   : > { %1193 = vmatprep.subr.bf16.mxu1 %v1935_v41 }
 0x1b1   : > { %1153 = vmatpush1.bf16.msra.mxu0 %v1921_v38 }
 0x1b2   : > { %1154 = vmatprep.subr.bf16.mxu0 %v1923_v39 }
 0x1b3   : > { %1194 = vmatpush1.bf16.msra.mxu1 %v1937_v45 }
 0x1b4   : > { %1195 = vmatprep.subr.bf16.mxu1 %v1938_v47 }
 0x1b5   : > { %1155 = vmatpush1.bf16.msra.mxu0 %v1927_v42 }
 0x1b6   : > { %1156 = vmatprep.subr.bf16.mxu0 %v1929_v43 }
 0x1b7   : > { %1196 = vmatpush1.bf16.msra.mxu1 %v1940_v49 }
 0x1b8   : > { %1197 = vmatprep.subr.bf16.mxu1 %v1941_v53 }
 0x1b9   : > { %1157 = vmatpush1.bf16.msra.mxu0 %v1933_v48 }
 0x1bb   : > { %1198 = vmatpush1.bf16.msra.mxu1 %v1943_v56 }
 0x1bc   : > { %1175 = vmatmul.mubr.bf16.vlgmr.msra.gmra.mxu0 %v949_v55 }
 0x1be   : > { %1216 = vmatmul.mubr.bf16.vlgmr.msra.gmra.mxu1 %v949_v55 }
 0x218   : > { %v1257_v44 = vpop.permute.xlu0 %1256 }
 0x219   : > { %vm1258_vm2 = vcmp.eq.s32.totalorder %v1257_v44, 1 }
 0x27c   : > { %v1176_v58 = vpop.f32.mrf.mxu0 }
 0x27d   : > { %v1224_v60 = vadd.f32 %v1176_v58, %v945_v57 }
 0x27e   : > { %v1178_v61 = vpop.f32.mrf.mxu0  ;;  %v1217_v3 = vpop.f32.mrf.mxu1 }
 0x27f   : > { %v1760_v62 = vmul.f32 -1.442695, %v1224_v60  ;;  %v1225_v63 = vadd.f32 %v1178_v61, %v946_v59  ;;  %v1226_v50 = vadd.f32 %v1217_v3, %v947_v8 }
 0x280   : > { %v1180_v1 = vpop.f32.mrf.mxu0  ;;  %v1219_v6 = vpop.f32.mrf.mxu1 }
 0x281   : > { %1944 = vpow2.f32 %v1760_v62  ;;  %v1761_v2 = vmul.f32 -1.442695, %v1225_v63  ;;  %v1762_v12 = vmul.f32 -1.442695, %v1226_v50  ;;  %v1227_v13 = vadd.f32 %v1219_v6, %v948_v51 }
 0x282   : > { %v1181_v5 = vpop.f32.mrf.mxu0  ;;  %v1221_v9 = vpop.f32.mrf.mxu1 }
 0x283   : > { %1946 = vpow2.f32 %v1761_v2 }
 0x284   : > { %v1222_v10 = vpop.f32.mrf.mxu1  ;;  %1948 = vpow2.f32 %v1762_v12 }
 0x285   : > { %1950 = vtanh.f32 %v1227_v13 }
 0x28e   : > { %v1945_v14 = vpop.eup %1944 }
 0x28f   : > { %v1237_v52 = vadd.f32 1.0, %v1945_v14 }
 0x290   : > { %v1947_v15 = vpop.eup %1946 }
 0x291   : > { %1952 = vrcp.f32 %v1237_v52  ;;  %v1238_v16 = vadd.f32 1.0, %v1947_v15  ;;  %v1949_v54 = vpop.eup %1948 }
 0x292   : > { %v1951_v46 = vpop.eup %1950  ;;  %v1239_v18 = vadd.f32 1.0, %v1949_v54 }
 0x293   : > { %1954 = vrcp.f32 %v1238_v16 }
 0x294   : > { %1956 = vrcp.f32 %v1239_v18 }
 0x29e   : > { %v1953_v7 = vpop.eup %1952 }
 0x29f   : > { %v1248_v20 = vmul.f32 %v1953_v7, %v1951_v46 }
 0x2a0   : > { %v1955_v11 = vpop.eup %1954 }
 0x2a1   : > { %v1247_v19 = vmul.f32 %v2211_v4, %v1955_v11  ;;  %v1957_v22 = vpop.eup %1956 }
 0x2a3   : > { %v1249_v21 = vadd.f32 %v1248_v20, %v1247_v19 }
 0x2a5   : > { %1958 = vtanh.f32 %v1249_v21  ;;  %v1260_v4 = vsel %vm1258_vm2, %v1249_v21, %v2211_v4  }
 0x2b2   : > { %v1959_v23 = vpop.eup %1958  ;;  %939 = sbr.rel (!%p936_p0) target bundleno = 410 (0x19a), region = 104 }
 0x2b3   : > { %v1251_v24 = vmul.f32 %v1959_v23, %v1957_v22 }
 0x2b5   : > { %v1259_v17 = vsel %vm1258_vm2, %v1251_v24, %v2215_v17   ;;  %v1261_v25 = vsel %vm1258_vm2, %v1251_v24, 0.0 }
 0x2b6   : > { %1263 = vst [vmem:[%s1262_s18] sm:$0xff] %v1261_v25 }
 0x2b7 PF:  { %1662 = sbr.rel (%p1725_p13) target bundleno = 986 (0x3da), region = 109  ;;  %s2592_s19 = smov (!%p1725_p13), 0  }
 0x2bc   :  { %v2588_v26 = vmov 0.0   ;;  %v2590_v27 = vmov 0.0  }
 0x2bd LB: > { %v1961_v4 = vld [vmem:[#allocation11 + $0xe4] ss:$16 sps:$4 sm:$0xff]   ;;  %s1764_s20 = sadd.s32 4294967295, %s2639_s12  ;;  %v1963_v17 = vld [vmem:[#allocation11 + $0xe0] ss:$16 sps:$4 sm:$0xff]   ;;  %v2247_v28 = vmov 0   ;;  %v1281_v3 = vpack.c.bf16 %v2227_v27, %v2227_v27  ;;  %s2231_s19 = sphi %s2592_s19, %s1267_s19   ;;  %v2227_v27 = vphi %v2590_v27, %v1591_v27   ;;  %v2223_v26 = vphi %v2588_v26, %v1592_v26  }
 0x2be   : > { %1506 = vmatprep.mubr.bf16.mxu0 %v2247_v28  ;;  %1547 = vmatprep.mubr.bf16.mxu1 %v2247_v28  ;;  %v1964_v29 = vld [vmem:[#allocation11 + $0xc4] ss:$16 sps:$4 sm:$0xff]   ;;  %s2605_s21 = ssub.s32 %s1764_s20, %s2231_s19  ;;  %v1966_v30 = vld [vmem:[#allocation11 + $0xc0] ss:$16 sps:$4 sm:$0xff]   ;;  %v1972_v33 = vld [vmem:[#allocation11 + $0xec] ss:$16 sps:$4 sm:$0xff]  }
 0x2bf   : > { %1474 = vmatprep.subr.bf16.mxu0 %v1961_v4  ;;  %1960 = vset.pattern.permute.xlu0 %v2247_v28  ;;  %v1584_v31 = vstv %s2605_s21  ;;  %v1967_v32 = vld [vmem:[#allocation11 + $0xa4] ss:$16 sps:$4 sm:$0xff]   ;;  %v1975_v35 = vld [vmem:[#allocation11 + $0xe8] ss:$16 sps:$4 sm:$0xff]   ;;  %v1969_v36 = vld [vmem:[#allocation11 + $0xa0] ss:$16 sps:$4 sm:$0xff]  }
 0x2c0   : > { %1475 = vmatpush1.bf16.msra.mxu0 %v1963_v17  ;;  %vm1585_vm3 = vcmp.lt.s32.totalorder %v1584_v31, %v2318_v0  ;;  %1515 = vmatprep.subr.bf16.mxu1 %v1972_v33  ;;  %v1970_v37 = vld [vmem:[#allocation11 + $0x84] ss:$16 sps:$4 sm:$0xff]   ;;  %v1978_v38 = vld [vmem:[#allocation11 + $0xcc] ss:$16 sps:$4 sm:$0xff]   ;;  %v1981_v39 = vld [vmem:[#allocation11 + $0xc8] ss:$16 sps:$4 sm:$0xff]  }
 0x2c1   : > { %1476 = vmatprep.subr.bf16.mxu0 %v1964_v29  ;;  %v1586_v34 = vsel %vm1585_vm3, 1, %v2247_v28  ;;  %1516 = vmatpush1.bf16.msra.mxu1 %v1975_v35  ;;  %v1974_v40 = vld [vmem:[#allocation11 + $0x80] ss:$16 sps:$4 sm:$0xff]   ;;  %v1976_v41 = vld [vmem:[#allocation11 + $0x64] ss:$16 sps:$4 sm:$0xff]   ;;  %s1803_s22 = sshll.u32 %s2605_s21, 6 }
 0x2c2   : > { %1588 = vperm.xlu0 %1960, %v1586_v34   ;;  %1517 = vmatprep.subr.bf16.mxu1 %v1978_v38  ;;  %v1984_v42 = vld [vmem:[#allocation11 + $0xac] ss:$16 sps:$4 sm:$0xff]   ;;  %v1987_v43 = vld [vmem:[#allocation11 + $0xa8] ss:$16 sps:$4 sm:$0xff]   ;;  %v1980_v47 = vld [vmem:[#allocation11 + $0x60] ss:$16 sps:$4 sm:$0xff]  }
 0x2c3   : > { %v1990_v45 = vld [vmem:[#allocation11 + $0x8c] ss:$16 sps:$4 sm:$0xff]   ;;  %v1982_v48 = vld [vmem:[#allocation11 + $0x44] ss:$16 sps:$4 sm:$0xff]   ;;  %v1993_v49 = vld [vmem:[#allocation11 + $0x88] ss:$16 sps:$4 sm:$0xff]  }
 0x2c4   : > { %1477 = vmatpush1.bf16.msra.mxu0 %v1966_v30  ;;  %v1996_v53 = vld [vmem:[#allocation11 + $0x6c] ss:$16 sps:$4 sm:$0xff]   ;;  %v1986_v55 = vld [vmem:[#allocation11 + $0x40] ss:$16 sps:$4 sm:$0xff]   ;;  %v1988_v56 = vld [vmem:[#allocation11 + $0x24] ss:$16 sps:$4 sm:$0xff]  }
 0x2c5   : > { %1478 = vmatprep.subr.bf16.mxu0 %v1967_v32  ;;  %1518 = vmatpush1.bf16.msra.mxu1 %v1981_v39  ;;  %v1999_v57 = vld [vmem:[#allocation11 + $0x68] ss:$16 sps:$4 sm:$0xff]   ;;  %v2000_v58 = vld [vmem:[#allocation11 + $0x4c] ss:$16 sps:$4 sm:$0xff]   ;;  %v1992_v59 = vld [vmem:[#allocation11 + $0x20] ss:$16 sps:$4 sm:$0xff]  }
 0x2c6   : > { %1519 = vmatprep.subr.bf16.mxu1 %v1984_v42  ;;  %v1994_v60 = vld [vmem:[#allocation11 + $0x4] ss:$16 sps:$4 sm:$0xff]   ;;  %v2002_v61 = vld [vmem:[#allocation11 + $0x48] ss:$16 sps:$4 sm:$0xff]   ;;  %v2003_v62 = vld [vmem:[#allocation11 + $0x2c] ss:$16 sps:$4 sm:$0xff]  }
 0x2c7   : > { %v1998_v63 = vld [vmem:[#allocation11] ss:$16 sps:$4 sm:$0xff]   ;;  %v2005_v1 = vld [vmem:[#allocation11 + $0x28] ss:$16 sps:$4 sm:$0xff]   ;;  %v2006_v2 = vld [vmem:[#allocation11 + $0xc] ss:$16 sps:$4 sm:$0xff]  }
 0x2c8   : > { %1479 = vmatpush1.bf16.msra.mxu0 %v1969_v36  ;;  %v2008_v5 = vld [vmem:[#allocation11 + $0x8] ss:$16 sps:$4 sm:$0xff]   ;;  %s1276_s23 = scalar_lea.vmem [#allocation2], %s1803_s22  ;;  %s1765_s24 = sshll.u32 %s2605_s21, 3 }
 0x2c9   : > { %1480 = vmatprep.subr.bf16.mxu0 %v1970_v37  ;;  %1520 = vmatpush1.bf16.msra.mxu1 %v1987_v43  ;;  %v1277_v6 = vld [vmem:[%s1276_s23 + $0x20] sm:$0xff]  ;;  %v1278_v9 = vld [vmem:[%s1276_s23 + $0x28] sm:$0xff]  ;;  %v1279_v54 = vld [vmem:[%s1276_s23 + $0x30] sm:$0xff]  ;;  %s1594_s3 = scalar_lea.vmem [#allocation14], %s1765_s24  ;;  %s1267_s19 = sadd.s32 1, %s2231_s19  }
 0x2ca   : > { %1521 = vmatprep.subr.bf16.mxu1 %v1990_v45  ;;  %v1280_v11 = vld [vmem:[%s1276_s23 + $0x38] sm:$0xff]  ;;  %p1266_p1 = scmp.ge.s32.totalorder %s1267_s19, %s2639_s12 }
 0x2cc   : > { %1481 = vmatpush1.bf16.msra.mxu0 %v1974_v40 }
 0x2cd   : > { %1482 = vmatprep.subr.bf16.mxu0 %v1976_v41  ;;  %1522 = vmatpush1.bf16.msra.mxu1 %v1993_v49 }
 0x2ce   : > { %1523 = vmatprep.subr.bf16.mxu1 %v1996_v53 }
 0x2d0   : > { %1483 = vmatpush1.bf16.msra.mxu0 %v1980_v47 }
 0x2d1   : > { %1484 = vmatprep.subr.bf16.mxu0 %v1982_v48  ;;  %1524 = vmatpush1.bf16.msra.mxu1 %v1999_v57 }
 0x2d2   : > { %1525 = vmatprep.subr.bf16.mxu1 %v2000_v58 }
 0x2d4   : > { %1485 = vmatpush1.bf16.msra.mxu0 %v1986_v55 }
 0x2d5   : > { %1486 = vmatprep.subr.bf16.mxu0 %v1988_v56  ;;  %1526 = vmatpush1.bf16.msra.mxu1 %v2002_v61 }
 0x2d6   : > { %1527 = vmatprep.subr.bf16.mxu1 %v2003_v62 }
 0x2d8   : > { %1487 = vmatpush1.bf16.msra.mxu0 %v1992_v59 }
 0x2d9   : > { %1488 = vmatprep.subr.bf16.mxu0 %v1994_v60  ;;  %1528 = vmatpush1.bf16.msra.mxu1 %v2005_v1 }
 0x2da   : > { %1529 = vmatprep.subr.bf16.mxu1 %v2006_v2 }
 0x2dc   : > { %1489 = vmatpush1.bf16.msra.mxu0 %v1998_v63 }
 0x2dd   : > { %1530 = vmatpush1.bf16.msra.mxu1 %v2008_v5 }
 0x2df   : > { %1507 = vmatmul.mubr.bf16.vlgmr.msra.gmra.mxu0 %v1281_v3 }
 0x2e0   : > { %1548 = vmatmul.mubr.bf16.vlgmr.msra.gmra.mxu1 %v1281_v3 }
 0x33d   : > { %v1589_v17 = vpop.permute.xlu0 %1588 }
 0x33e   : > { %vm1590_vm4 = vcmp.eq.s32.totalorder %v1589_v17, 1 }
 0x39f   : > { %v1508_v8 = vpop.f32.mrf.mxu0 }
 0x3a0   : > { %v1556_v50 = vadd.f32 %v1508_v8, %v1277_v6  ;;  %v1549_v52 = vpop.f32.mrf.mxu1 }
 0x3a1   : > { %v1510_v10 = vpop.f32.mrf.mxu0  ;;  %v1558_v7 = vadd.f32 %v1549_v52, %v1279_v54 }
 0x3a2   : > { %v1799_v51 = vmul.f32 -1.442695, %v1556_v50  ;;  %v1557_v12 = vadd.f32 %v1510_v10, %v1278_v9  ;;  %v1551_v16 = vpop.f32.mrf.mxu1 }
 0x3a3   : > { %v1512_v13 = vpop.f32.mrf.mxu0  ;;  %v1801_v18 = vmul.f32 -1.442695, %v1558_v7  ;;  %v1559_v19 = vadd.f32 %v1551_v16, %v1280_v11 }
 0x3a4   : > { %2009 = vpow2.f32 %v1799_v51  ;;  %v1800_v14 = vmul.f32 -1.442695, %v1557_v12  ;;  %v1553_v46 = vpop.f32.mrf.mxu1 }
 0x3a5   : > { %v1513_v15 = vpop.f32.mrf.mxu0 }
 0x3a6   : > { %2011 = vpow2.f32 %v1800_v14  ;;  %v1554_v44 = vpop.f32.mrf.mxu1 }
 0x3a7   : > { %2013 = vpow2.f32 %v1801_v18 }
 0x3a8   : > { %2015 = vtanh.f32 %v1559_v19 }
 0x3b1   : > { %v2010_v20 = vpop.eup %2009 }
 0x3b2   : > { %v1569_v21 = vadd.f32 1.0, %v2010_v20 }
 0x3b3   : > { %v2012_v22 = vpop.eup %2011 }
 0x3b4   : > { %2017 = vrcp.f32 %v1569_v21  ;;  %v1570_v23 = vadd.f32 1.0, %v2012_v22  ;;  %v2014_v24 = vpop.eup %2013 }
 0x3b5   : > { %v2016_v25 = vpop.eup %2015  ;;  %v1571_v29 = vadd.f32 1.0, %v2014_v24 }
 0x3b6   : > { %2019 = vrcp.f32 %v1570_v23 }
 0x3b7   : > { %2021 = vrcp.f32 %v1571_v29 }
 0x3c1   : > { %v2018_v4 = vpop.eup %2017 }
 0x3c2   : > { %v1580_v31 = vmul.f32 %v2018_v4, %v2016_v25 }
 0x3c3   : > { %v2020_v28 = vpop.eup %2019 }
 0x3c4   : > { %v1579_v30 = vmul.f32 %v2223_v26, %v2020_v28  ;;  %v2022_v33 = vpop.eup %2021 }
 0x3c6   : > { %v1581_v32 = vadd.f32 %v1580_v31, %v1579_v30 }
 0x3c8   : > { %2023 = vtanh.f32 %v1581_v32  ;;  %v1592_v26 = vsel %vm1590_vm4, %v1581_v32, %v2223_v26  }
 0x3d5   : > { %v2024_v34 = vpop.eup %2023  ;;  %1269 = sbr.rel (!%p1266_p1) target bundleno = 701 (0x2bd), region = 115 }
 0x3d6   : > { %v1583_v35 = vmul.f32 %v2024_v34, %v2022_v33 }
 0x3d8   : > { %v1591_v27 = vsel %vm1590_vm4, %v1583_v35, %v2227_v27   ;;  %v1593_v36 = vsel %vm1590_vm4, %v1583_v35, 0.0 }
 0x3d9   : > { %1595 = vst [vmem:[%s1594_s3] sm:$0xff] %v1593_v36 }
 0x3da PF:  { %s2248_s25 = smov [#allocation13]  }
 0x3db   :  { %s1601_s26 = sshll.u32 %s2248_s25, 4  ;;  %s1602_s26 = int_to_ptr.vmem [resolvable:$true] %s1601_s26 }
 0x3dc   :  { %s2117_s27 = scalar_lea.vmem %s1602_s26, 2048  ;;  %p2122_p3 = scmp.lt.s32.totalorder %s1602_s26, %s1602_s26 }
 0x3dd   :  { %p2118_p2 = scmp.ne.s32.totalorder %s1602_s26, %s2117_s27  ;;  %p2123_p4 = scmp.lt.s32.totalorder %s2117_s27, %s2117_s27 }
 0x3df   :  { %p2124_p5 = por %p2123_p4, %p2122_p3 }
 0x3e1   :  { %p2125_p6 = pnand %p2124_p5, %p2118_p2 }
 0x3e3   :  { %2128 = shalt.err (!%p2125_p6)
}
 0x3e4   :  { %s2249_s28 = smov 128   ;;  %s2250_s29 = smov 8  }
 0x3e5   :  { %1607 = dma.vmem_to_hbm [thread:$0]  %s1602_s26, 2048, %s2637_s7, [#allocation7], %s2249_s28, %s2249_s28, %s2250_s29  }
 0x3e6   :  { %s2251_s9 = smov [#allocation14]  }
 0x3e7   :  { %s1613_s10 = sshll.u32 %s2251_s9, 4  ;;  %s1614_s10 = int_to_ptr.vmem [resolvable:$true] %s1613_s10 }
 0x3e8   :  { %s2137_s5 = scalar_lea.vmem %s1614_s10, 2048  ;;  %p2142_p8 = scmp.lt.s32.totalorder %s1614_s10, %s1614_s10 }
 0x3e9   :  { %p2138_p7 = scmp.ne.s32.totalorder %s1614_s10, %s2137_s5  ;;  %p2143_p9 = scmp.lt.s32.totalorder %s2137_s5, %s2137_s5 }
 0x3eb   :  { %p2144_p10 = por %p2143_p9, %p2142_p8 }
 0x3ed   :  { %p2145_p11 = pnand %p2144_p10, %p2138_p7 }
 0x3ef   :  { %2148 = shalt.err (!%p2145_p11)
}
 0x3f0   :  { %1619 = dma.vmem_to_hbm [thread:$0]  %s1614_s10, 2048, %s2638_s8, [#allocation15], %s2249_s28, %s2249_s28, %s2250_s29  }
 0x3f1   :  { %2197 = dma.done.wait [#allocation7], 2048  }
 0x3f2   :  { %2198 = vsyncadd [#allocation7], 4294965248 }
 0x3f3   :  { %2199 = dma.done.wait [#allocation15], 2048  }
 0x3f4   :  { %2200 = vsyncadd [#allocation15], 4294965248 }
 0x3f5   :  { %1626 = vsyncpa [#allocation6], 1 }
 0x3f6   :  { %1627 = vsyncpa [#allocation9], 1 }
 0x3f7   :  { %1628 = vsyncpa [#allocation12], 1 }
 0x3f8   :  { %1629 = vsyncpa [#allocation7], 1 }
 0x3f9   :  { %1630 = vsyncpa [#allocation15], 1 }

</bundles_post_ra>
